<compile_context>
chip_gen: v5e
topology: v5e:2x2
jax: 0.10.0
libtpu: 0.0.40
codegen_flags: <defaults>
</compile_context>

<pallas_src>
import functools
import math

import jax
import jax.numpy as jnp
from jax.experimental import pallas as pl
from jax.experimental.pallas import tpu as pltpu


# ---------------------------------------------------------------------------
# Fused Pallas kernel: whole decoder forward for ONE batch element per grid step
# ---------------------------------------------------------------------------

def _decoder_kernel(x_ref, ctx_ref, wA_ref, wB_ref, vec_ref, o_ref, *,
                    D, H, FF, n_layers, eps):
    f32 = jnp.float32
    bf16 = jnp.bfloat16
    Dh = D // H

    x = x_ref[...].astype(f32)           # (T, D) activations, f32
    ctx_bf = ctx_ref[...].astype(bf16)   # (S, D) used only as a matmul operand

    def layernorm(v, g, b):
        # Two independent reductions (mean, mean-of-squares) -> shorter chain.
        m = jnp.mean(v, axis=-1, keepdims=True)
        m2 = jnp.mean(v * v, axis=-1, keepdims=True)
        var = m2 - m * m
        return (v - m) * jax.lax.rsqrt(var + eps) * g + b

    def softmax_rows(s):
        mx = jnp.max(s, axis=-1, keepdims=True)
        p = jnp.exp(s - mx)
        denom = jnp.sum(p, axis=-1, keepdims=True)
        return p * pl.reciprocal(denom, approx=True)

    def attend(q, k, v):
        # q:(T,Dh), k/v:(Sk,Dh); 1/sqrt(Dh) already folded into the Q projection.
        s = jax.lax.dot_general(q.astype(bf16), k.astype(bf16),
                                (((1,), (1,)), ((), ())),
                                preferred_element_type=f32)
        p = softmax_rows(s)
        return jnp.dot(p.astype(bf16), v.astype(bf16), preferred_element_type=f32)

    for layer in range(n_layers):
        wA = wA_ref[layer]      # (D, 8D+FF) bf16 matmul-weight slab
        w2 = wB_ref[layer]      # (FF, D)    bf16
        vec = vec_ref[layer]    # (13, max(3D, FF)) f32 bias / LayerNorm slab

        sa_w_in = wA[:, 0:3 * D]
        sa_w_out = wA[:, 3 * D:4 * D]
        ca_w_q = wA[:, 4 * D:5 * D]
        ca_w_kv = wA[:, 5 * D:7 * D]
        ca_w_out = wA[:, 7 * D:8 * D]
        ff_w1 = wA[:, 8 * D:8 * D + FF]

        sa_b_in = vec[0:1, 0:3 * D]
        sa_b_out = vec[1:2, 0:D]
        ca_b_q = vec[2:3, 0:D]
        ca_b_kv = vec[3:4, 0:2 * D]
        ca_b_out = vec[4:5, 0:D]
        n1_g, n1_b = vec[5:6, 0:D], vec[6:7, 0:D]
        n2_g, n2_b = vec[7:8, 0:D], vec[8:9, 0:D]
        ff_b1 = vec[9:10, 0:FF]
        ff_b2 = vec[10:11, 0:D]
        n3_g, n3_b = vec[11:12, 0:D], vec[12:13, 0:D]

        # Cross-attn K/V depends only on ctx -> hoist so this GEMM can overlap
        # with the self-attention dependent chain.
        kv = jnp.dot(ctx_bf, ca_w_kv, preferred_element_type=f32) + ca_b_kv  # (S, 2D)

        # ---------------- self-attention ----------------
        qkv = jnp.dot(x.astype(bf16), sa_w_in,
                      preferred_element_type=f32) + sa_b_in                  # (T, 3D)
        heads = []
        for h in range(H):
            c = h * Dh
            heads.append(attend(qkv[:, c:c + Dh],
                                qkv[:, D + c:D + c + Dh],
                                qkv[:, 2 * D + c:2 * D + c + Dh]))
        sa = jnp.concatenate(heads, axis=1)                                  # (T, D)
        sa_out = jnp.dot(sa.astype(bf16), sa_w_out,
                         preferred_element_type=f32) + sa_b_out
        x = layernorm(x + sa_out, n1_g, n1_b)

        # ---------------- cross-attention ----------------
        q = jnp.dot(x.astype(bf16), ca_w_q,
                    preferred_element_type=f32) + ca_b_q                     # (T, D)
        heads = []
        for h in range(H):
            c = h * Dh
            heads.append(attend(q[:, c:c + Dh],
                                kv[:, c:c + Dh],
                                kv[:, D + c:D + c + Dh]))
        ca = jnp.concatenate(heads, axis=1)
        ca_out = jnp.dot(ca.astype(bf16), ca_w_out,
                         preferred_element_type=f32) + ca_b_out
        x = layernorm(x + ca_out, n2_g, n2_b)

        # ---------------- FFN (linear1 + ReLU + linear2) ----------------
        h1 = jnp.maximum(jnp.dot(x.astype(bf16), ff_w1,
                                 preferred_element_type=f32) + ff_b1, 0.0)
        y = jnp.dot(h1.astype(bf16), w2, preferred_element_type=f32) + ff_b2
        x = layernorm(x + y, n3_g, n3_b)

    o_ref[...] = x.astype(o_ref.dtype)


def transformer_decoder(x, context, packed, *, n_heads,
                        tgt_key_padding_mask=None, memory_key_padding_mask=None):
    """x: (B, T, D), context: (B, S, D). One fused pallas_call, grid=(B,)."""
    # TODO(synk): key-padding masks / causal tgt_mask not implemented (module's
    # default call passes None for both).
    assert tgt_key_padding_mask is None and memory_key_padding_mask is None
    wA, wB, vec = packed
    B, T, D = x.shape
    S = context.shape[1]
    n_layers = wA.shape[0]
    FF = wB.shape[1]
    assert D % n_heads == 0

    kernel = functools.partial(_decoder_kernel, D=D, H=n_heads, FF=FF,
                               n_layers=n_layers, eps=1e-5)

    # NOTE (scaling guard): all weights (~20 KB bf16) stay VMEM-resident. If
    # D/FF/n_layers grow past a few MiB (v7x: 64 MiB VMEM, 32 MiB default
    # scoped), switch to a layer grid axis that streams per-layer slabs via
    # BlockSpec and set vmem_limit_bytes explicitly.
    return pl.pallas_call(
        kernel,
        out_shape=jax.ShapeDtypeStruct((B, T, D), x.dtype),
        grid=(B,),
        in_specs=[
            pl.BlockSpec((None, T, D), lambda i: (i, 0, 0)),   # x: one batch row
            pl.BlockSpec((None, S, D), lambda i: (i, 0, 0)),   # ctx: one batch row
            pl.BlockSpec(wA.shape, lambda i: (0, 0, 0)),       # weight slab (resident)
            pl.BlockSpec(wB.shape, lambda i: (0, 0, 0)),       # ffn-w2 slab (resident)
            pl.BlockSpec(vec.shape, lambda i: (0, 0, 0)),      # bias/LN slab (resident)
        ],
        out_specs=pl.BlockSpec((None, T, D), lambda i: (i, 0, 0)),
        compiler_params=pltpu.CompilerParams(
            dimension_semantics=("parallel",)),  # batch rows independent -> 2nd TC on v7x
    )(x, context, wA, wB, vec)


# ---------------------------------------------------------------------------
# Parameter init (PyTorch layout) + one-time packing for the kernel
# ---------------------------------------------------------------------------

def init_params(key, d_model, n_heads, n_layers, d_ff):
    params = []
    for layer_idx in range(n_layers):
        kk = jax.random.fold_in(key, layer_idx)
        ks = jax.random.split(kk, 8)

        def nrm(k, shape, scale=0.05):
            return scale * jax.random.normal(k, shape, jnp.float32)

        layer = {
            "self_attn": {
                "in_proj_weight": nrm(ks[0], (3 * d_model, d_model)),
                "in_proj_bias": nrm(ks[1], (3 * d_model,)),
                "out_proj_weight": nrm(ks[2], (d_model, d_model)),
                "out_proj_bias": jnp.zeros((d_model,), jnp.float32),
            },
            "cross_attn": {
                "in_proj_weight": nrm(ks[3], (3 * d_model, d_model)),
                "in_proj_bias": nrm(ks[4], (3 * d_model,)),
                "out_proj_weight": nrm(ks[5], (d_model, d_model)),
                "out_proj_bias": jnp.zeros((d_model,), jnp.float32),
            },
            "linear1_w": nrm(ks[6], (d_ff, d_model)),
            "linear1_b": jnp.zeros((d_ff,), jnp.float32),
            "linear2_w": nrm(ks[7], (d_model, d_ff)),
            "linear2_b": jnp.zeros((d_model,), jnp.float32),
            "norm1_w": jnp.ones((d_model,), jnp.float32),
            "norm1_b": jnp.zeros((d_model,), jnp.float32),
            "norm2_w": jnp.ones((d_model,), jnp.float32),
            "norm2_b": jnp.zeros((d_model,), jnp.float32),
            "norm3_w": jnp.ones((d_model,), jnp.float32),
            "norm3_b": jnp.zeros((d_model,), jnp.float32),
        }
        params.append(layer)
    return params


def prepare_params(params, n_heads):
    """One-time layout prep: transpose to (in, out), fold 1/sqrt(head_dim) into
    the Q projections, pack matmul weights into bf16 slabs and biases/LN params
    into one f32 slab per layer, stacked over layers."""
    d = params[0]["norm1_w"].shape[0]
    dh = d // n_heads
    scale = 1.0 / math.sqrt(dh)

    wA_l, wB_l, vec_l = [], [], []
    for p in params:
        sa, ca = p["self_attn"], p["cross_attn"]
        ff = p["linear1_b"].shape[0]
        width = max(3 * d, ff)

        sa_w = sa["in_proj_weight"].at[:d].multiply(scale)   # scale Q rows
        sa_b = sa["in_proj_bias"].at[:d].multiply(scale)
        ca_wq = ca["in_proj_weight"][:d] * scale
        ca_bq = ca["in_proj_bias"][:d] * scale
        ca_wkv = ca["in_proj_weight"][d:]
        ca_bkv = ca["in_proj_bias"][d:]

        slabA = jnp.concatenate([
            sa_w.T,                      # (d, 3d)   cols 0       .. 3d
            sa["out_proj_weight"].T,     # (d, d)    cols 3d      .. 4d
            ca_wq.T,                     # (d, d)    cols 4d      .. 5d
            ca_wkv.T,                    # (d, 2d)   cols 5d      .. 7d
            ca["out_proj_weight"].T,     # (d, d)    cols 7d      .. 8d
            p["linear1_w"].T,            # (d, ff)   cols 8d      .. 8d+ff
        ], axis=1).astype(jnp.bfloat16)
        slabB = p["linear2_w"].T.astype(jnp.bfloat16)        # (ff, d)

        def row(v):
            v = jnp.asarray(v, jnp.float32).reshape(-1)
            return jnp.pad(v, (0, width - v.shape[0]))

        vec = jnp.stack([
            row(sa_b), row(sa["out_proj_bias"]),
            row(ca_bq), row(ca_bkv), row(ca["out_proj_bias"]),
            row(p["norm1_w"]), row(p["norm1_b"]),
            row(p["norm2_w"]), row(p["norm2_b"]),
            row(p["linear1_b"]), row(p["linear2_b"]),
            row(p["norm3_w"]), row(p["norm3_b"]),
        ])                                                   # (13, width) f32

        wA_l.append(slabA)
        wB_l.append(slabB)
        vec_l.append(vec)

    return (jnp.stack(wA_l), jnp.stack(wB_l), jnp.stack(vec_l))


# ---------------------------------------------------------------------------
# Pure-JAX reference (PyTorch-layout params, f32) for validation
# ---------------------------------------------------------------------------

def _ref_ln(x, g, b, eps=1e-5):
    m = jnp.mean(x, axis=-1, keepdims=True)
    v = jnp.mean((x - m) ** 2, axis=-1, keepdims=True)
    return (x - m) * jax.lax.rsqrt(v + eps) * g + b


def _ref_mha(q_in, k_in, v_in, p, n_heads):
    B, T, D = q_in.shape
    S = k_in.shape[1]
    Dh = D // n_heads
    wq, wk, wv = jnp.split(p["in_proj_weight"], 3, axis=0)
    bq, bk, bv = jnp.split(p["in_proj_bias"], 3)
    hi = jax.lax.Precision.HIGHEST
    q = (jnp.einsum("btd,ed->bte", q_in, wq, precision=hi) + bq).reshape(B, T, n_heads, Dh).transpose(0, 2, 1, 3)
    k = (jnp.einsum("bsd,ed->bse", k_in, wk, precision=hi) + bk).reshape(B, S, n_heads, Dh).transpose(0, 2, 1, 3)
    v = (jnp.einsum("bsd,ed->bse", v_in, wv, precision=hi) + bv).reshape(B, S, n_heads, Dh).transpose(0, 2, 1, 3)
    s = jnp.einsum("bhtd,bhsd->bhts", q, k, precision=hi) / math.sqrt(Dh)
    a = jax.nn.softmax(s, axis=-1)
    o = jnp.einsum("bhts,bhsd->bhtd", a, v, precision=hi)
    o = o.transpose(0, 2, 1, 3).reshape(B, T, D)
    return jnp.einsum("btd,ed->bte", o, p["out_proj_weight"], precision=hi) + p["out_proj_bias"]


def reference(x, context, params, n_heads):
    hi = jax.lax.Precision.HIGHEST
    for p in params:
        sa = _ref_mha(x, x, x, p["self_attn"], n_heads)
        x = _ref_ln(x + sa, p["norm1_w"], p["norm1_b"])
        ca = _ref_mha(x, context, context, p["cross_attn"], n_heads)
        x = _ref_ln(x + ca, p["norm2_w"], p["norm2_b"])
        h = jnp.maximum(jnp.einsum("btd,fd->btf", x, p["linear1_w"], precision=hi) + p["linear1_b"], 0.0)
        h = jnp.einsum("btf,df->btd", h, p["linear2_w"], precision=hi) + p["linear2_b"]
        x = _ref_ln(x + h, p["norm3_w"], p["norm3_b"])
    return x


# ---------------------------------------------------------------------------

if __name__ == "__main__":
    B, T, S = 2, 8, 12          # batch, target seq, memory seq
    D, H, L, FF = 32, 2, 2, 64  # d_model, n_heads, n_layers, dim_feedforward

    key = jax.random.PRNGKey(0)
    kx, kc, kp = jax.random.split(key, 3)
    x = jax.random.normal(kx, (B, T, D), jnp.float32)
    context = jax.random.normal(kc, (B, S, D), jnp.float32)
    params = init_params(kp, D, H, L, FF)

    # One-time layout preparation (transposes, scale folding, bf16 cast, packing).
    packed = jax.block_until_ready(prepare_params(params, H))

    fwd = jax.jit(functools.partial(transformer_decoder, n_heads=H))
    out = jax.block_until_ready(fwd(x, context, packed))

    ref = reference(x, context, params, n_heads=H)
    assert out.shape == (B, T, D), out.shape
    err = float(jnp.max(jnp.abs(out - ref)))
    # bf16 MXU operands + approx softmax reciprocal give a few 1e-3 of drift vs
    # the f32 reference; 5e-2 comfortably bounds that while catching real bugs.
    assert err < 5e-2, f"max abs error {err}"
    print("KERNEL_OK")
</pallas_src>

<mosaic_0001>
module attributes {stable_mosaic.version = 11 : i64} {
  func.func @_decoder_kernel(%arg0: i32, %arg1: memref<1x8x32xf32, #tpu.memory_space<vmem>>, %arg2: memref<1x12x32xf32, #tpu.memory_space<vmem>>, %arg3: memref<2x32x320xbf16, #tpu.memory_space<vmem>>, %arg4: memref<2x64x32xbf16, #tpu.memory_space<vmem>>, %arg5: memref<2x13x96xf32, #tpu.memory_space<vmem>>, %arg6: memref<1x8x32xf32, #tpu.memory_space<vmem>>) attributes {dimension_semantics = [#tpu.dimension_semantics<parallel>], iteration_bounds = array<i64: 2>, scalar_prefetch = 0 : i64, scratch_operands = 0 : i64, tpu.core_type = #tpu.core_type<tc>, window_params = [{transform_indices = @transform_0, window_bounds = array<i64: 1, 8, 32>}, {transform_indices = @transform_1, window_bounds = array<i64: 1, 12, 32>}, {pipeline_mode = #tpu.pipeline_mode<synchronous>, transform_indices = @transform_2, window_bounds = array<i64: 2, 32, 320>}, {pipeline_mode = #tpu.pipeline_mode<synchronous>, transform_indices = @transform_3, window_bounds = array<i64: 2, 64, 32>}, {pipeline_mode = #tpu.pipeline_mode<synchronous>, transform_indices = @transform_4, window_bounds = array<i64: 2, 13, 96>}, {transform_indices = @transform_5, window_bounds = array<i64: 1, 8, 32>}]} {
    %c0 = arith.constant 0 : index
    %c0_0 = arith.constant 0 : index
    %c0_1 = arith.constant 0 : index
    %0 = vector.load %arg1[%c0, %c0_0, %c0_1] : memref<1x8x32xf32, #tpu.memory_space<vmem>>, vector<1x8x32xf32>
    %1 = vector.shape_cast %0 : vector<1x8x32xf32> to vector<8x32xf32>
    %c0_2 = arith.constant 0 : index
    %c0_3 = arith.constant 0 : index
    %c0_4 = arith.constant 0 : index
    %2 = vector.load %arg2[%c0_2, %c0_3, %c0_4] : memref<1x12x32xf32, #tpu.memory_space<vmem>>, vector<1x12x32xf32>
    %3 = vector.shape_cast %2 : vector<1x12x32xf32> to vector<12x32xf32>
    %4 = arith.truncf %3 : vector<12x32xf32> to vector<12x32xbf16>
    %c0_5 = arith.constant 0 : index
    %c0_6 = arith.constant 0 : index
    %c0_7 = arith.constant 0 : index
    %5 = vector.load %arg3[%c0_5, %c0_6, %c0_7] : memref<2x32x320xbf16, #tpu.memory_space<vmem>>, vector<1x32x320xbf16>
    %6 = vector.shape_cast %5 : vector<1x32x320xbf16> to vector<32x320xbf16>
    %c0_8 = arith.constant 0 : index
    %c0_9 = arith.constant 0 : index
    %c0_10 = arith.constant 0 : index
    %7 = vector.load %arg4[%c0_8, %c0_9, %c0_10] : memref<2x64x32xbf16, #tpu.memory_space<vmem>>, vector<1x64x32xbf16>
    %8 = vector.shape_cast %7 : vector<1x64x32xbf16> to vector<64x32xbf16>
    %c0_11 = arith.constant 0 : index
    %c0_12 = arith.constant 0 : index
    %c0_13 = arith.constant 0 : index
    %9 = vector.load %arg5[%c0_11, %c0_12, %c0_13] : memref<2x13x96xf32, #tpu.memory_space<vmem>>, vector<1x13x96xf32>
    %10 = vector.shape_cast %9 : vector<1x13x96xf32> to vector<13x96xf32>
    %11 = vector.extract_strided_slice %6 {offsets = [0, 0], sizes = [32, 96], strides = [1, 1]} : vector<32x320xbf16> to vector<32x96xbf16>
    %12 = vector.extract_strided_slice %6 {offsets = [0, 96], sizes = [32, 32], strides = [1, 1]} : vector<32x320xbf16> to vector<32x32xbf16>
    %13 = vector.extract_strided_slice %6 {offsets = [0, 128], sizes = [32, 32], strides = [1, 1]} : vector<32x320xbf16> to vector<32x32xbf16>
    %14 = vector.extract_strided_slice %6 {offsets = [0, 160], sizes = [32, 64], strides = [1, 1]} : vector<32x320xbf16> to vector<32x64xbf16>
    %15 = vector.extract_strided_slice %6 {offsets = [0, 224], sizes = [32, 32], strides = [1, 1]} : vector<32x320xbf16> to vector<32x32xbf16>
    %16 = vector.extract_strided_slice %6 {offsets = [0, 256], sizes = [32, 64], strides = [1, 1]} : vector<32x320xbf16> to vector<32x64xbf16>
    %17 = vector.extract_strided_slice %10 {offsets = [0, 0], sizes = [1, 96], strides = [1, 1]} : vector<13x96xf32> to vector<1x96xf32>
    %18 = vector.extract_strided_slice %10 {offsets = [1, 0], sizes = [1, 32], strides = [1, 1]} : vector<13x96xf32> to vector<1x32xf32>
    %19 = vector.extract_strided_slice %10 {offsets = [2, 0], sizes = [1, 32], strides = [1, 1]} : vector<13x96xf32> to vector<1x32xf32>
    %20 = vector.extract_strided_slice %10 {offsets = [3, 0], sizes = [1, 64], strides = [1, 1]} : vector<13x96xf32> to vector<1x64xf32>
    %21 = vector.extract_strided_slice %10 {offsets = [4, 0], sizes = [1, 32], strides = [1, 1]} : vector<13x96xf32> to vector<1x32xf32>
    %22 = vector.extract_strided_slice %10 {offsets = [5, 0], sizes = [1, 32], strides = [1, 1]} : vector<13x96xf32> to vector<1x32xf32>
    %23 = vector.extract_strided_slice %10 {offsets = [6, 0], sizes = [1, 32], strides = [1, 1]} : vector<13x96xf32> to vector<1x32xf32>
    %24 = vector.extract_strided_slice %10 {offsets = [7, 0], sizes = [1, 32], strides = [1, 1]} : vector<13x96xf32> to vector<1x32xf32>
    %25 = vector.extract_strided_slice %10 {offsets = [8, 0], sizes = [1, 32], strides = [1, 1]} : vector<13x96xf32> to vector<1x32xf32>
    %26 = vector.extract_strided_slice %10 {offsets = [9, 0], sizes = [1, 64], strides = [1, 1]} : vector<13x96xf32> to vector<1x64xf32>
    %27 = vector.extract_strided_slice %10 {offsets = [10, 0], sizes = [1, 32], strides = [1, 1]} : vector<13x96xf32> to vector<1x32xf32>
    %28 = vector.extract_strided_slice %10 {offsets = [11, 0], sizes = [1, 32], strides = [1, 1]} : vector<13x96xf32> to vector<1x32xf32>
    %29 = vector.extract_strided_slice %10 {offsets = [12, 0], sizes = [1, 32], strides = [1, 1]} : vector<13x96xf32> to vector<1x32xf32>
    %cst = arith.constant dense<0.000000e+00> : vector<12x64xf32>
    %30 = tpu.matmul %4, %14, %cst {dimension_numbers = #tpu.dot_dimension_numbers<[1], [0], [0], [1], [0, 0, 1, 1], [], []>} : vector<12x32xbf16>, vector<32x64xbf16>, vector<12x64xf32> -> vector<12x64xf32>
    %31 = vector.broadcast %20 : vector<1x64xf32> to vector<12x64xf32>
    %32 = arith.addf %30, %31 : vector<12x64xf32>
    %33 = arith.truncf %1 : vector<8x32xf32> to vector<8x32xbf16>
    %cst_14 = arith.constant dense<0.000000e+00> : vector<8x96xf32>
    %34 = tpu.matmul %33, %11, %cst_14 {dimension_numbers = #tpu.dot_dimension_numbers<[1], [0], [0], [1], [0, 0, 1, 1], [], []>} : vector<8x32xbf16>, vector<32x96xbf16>, vector<8x96xf32> -> vector<8x96xf32>
    %35 = vector.broadcast %17 : vector<1x96xf32> to vector<8x96xf32>
    %36 = arith.addf %34, %35 : vector<8x96xf32>
    %37 = vector.extract_strided_slice %36 {offsets = [0, 0], sizes = [8, 16], strides = [1, 1]} : vector<8x96xf32> to vector<8x16xf32>
    %38 = vector.extract_strided_slice %36 {offsets = [0, 32], sizes = [8, 16], strides = [1, 1]} : vector<8x96xf32> to vector<8x16xf32>
    %39 = vector.extract_strided_slice %36 {offsets = [0, 64], sizes = [8, 16], strides = [1, 1]} : vector<8x96xf32> to vector<8x16xf32>
    %40 = arith.truncf %37 : vector<8x16xf32> to vector<8x16xbf16>
    %41 = arith.truncf %38 : vector<8x16xf32> to vector<8x16xbf16>
    %cst_15 = arith.constant dense<0.000000e+00> : vector<8x8xf32>
    %42 = tpu.matmul %40, %41, %cst_15 {dimension_numbers = #tpu.dot_dimension_numbers<[1], [1], [0], [0], [0, 0, 1, 0], [], []>} : vector<8x16xbf16>, vector<8x16xbf16>, vector<8x8xf32> -> vector<8x8xf32>
    %cst_16 = arith.constant dense<0xFF800000> : vector<8xf32>
    %43 = vector.multi_reduction <maximumf>, %42, %cst_16 [1] : vector<8x8xf32> to vector<8xf32>
    %44 = vector.shape_cast %43 : vector<8xf32> to vector<8x1xf32>
    %45 = vector.broadcast %44 : vector<8x1xf32> to vector<8x8xf32>
    %46 = arith.subf %42, %45 : vector<8x8xf32>
    %47 = math.exp %46 : vector<8x8xf32>
    %cst_17 = arith.constant dense<0.000000e+00> : vector<8xf32>
    %48 = vector.multi_reduction <add>, %47, %cst_17 [1] : vector<8x8xf32> to vector<8xf32>
    %49 = vector.shape_cast %48 : vector<8xf32> to vector<8x1xf32>
    %50 = tpu.reciprocal %49 {approx = true} : vector<8x1xf32> -> vector<8x1xf32>
    %51 = vector.broadcast %50 : vector<8x1xf32> to vector<8x8xf32>
    %52 = arith.mulf %47, %51 : vector<8x8xf32>
    %53 = arith.truncf %52 : vector<8x8xf32> to vector<8x8xbf16>
    %54 = arith.truncf %39 : vector<8x16xf32> to vector<8x16xbf16>
    %cst_18 = arith.constant dense<0.000000e+00> : vector<8x16xf32>
    %55 = tpu.matmul %53, %54, %cst_18 {dimension_numbers = #tpu.dot_dimension_numbers<[1], [0], [0], [1], [0, 0, 1, 1], [], []>} : vector<8x8xbf16>, vector<8x16xbf16>, vector<8x16xf32> -> vector<8x16xf32>
    %56 = vector.extract_strided_slice %36 {offsets = [0, 16], sizes = [8, 16], strides = [1, 1]} : vector<8x96xf32> to vector<8x16xf32>
    %57 = vector.extract_strided_slice %36 {offsets = [0, 48], sizes = [8, 16], strides = [1, 1]} : vector<8x96xf32> to vector<8x16xf32>
    %58 = vector.extract_strided_slice %36 {offsets = [0, 80], sizes = [8, 16], strides = [1, 1]} : vector<8x96xf32> to vector<8x16xf32>
    %59 = arith.truncf %56 : vector<8x16xf32> to vector<8x16xbf16>
    %60 = arith.truncf %57 : vector<8x16xf32> to vector<8x16xbf16>
    %cst_19 = arith.constant dense<0.000000e+00> : vector<8x8xf32>
    %61 = tpu.matmul %59, %60, %cst_19 {dimension_numbers = #tpu.dot_dimension_numbers<[1], [1], [0], [0], [0, 0, 1, 0], [], []>} : vector<8x16xbf16>, vector<8x16xbf16>, vector<8x8xf32> -> vector<8x8xf32>
    %cst_20 = arith.constant dense<0xFF800000> : vector<8xf32>
    %62 = vector.multi_reduction <maximumf>, %61, %cst_20 [1] : vector<8x8xf32> to vector<8xf32>
    %63 = vector.shape_cast %62 : vector<8xf32> to vector<8x1xf32>
    %64 = vector.broadcast %63 : vector<8x1xf32> to vector<8x8xf32>
    %65 = arith.subf %61, %64 : vector<8x8xf32>
    %66 = math.exp %65 : vector<8x8xf32>
    %cst_21 = arith.constant dense<0.000000e+00> : vector<8xf32>
    %67 = vector.multi_reduction <add>, %66, %cst_21 [1] : vector<8x8xf32> to vector<8xf32>
    %68 = vector.shape_cast %67 : vector<8xf32> to vector<8x1xf32>
    %69 = tpu.reciprocal %68 {approx = true} : vector<8x1xf32> -> vector<8x1xf32>
    %70 = vector.broadcast %69 : vector<8x1xf32> to vector<8x8xf32>
    %71 = arith.mulf %66, %70 : vector<8x8xf32>
    %72 = arith.truncf %71 : vector<8x8xf32> to vector<8x8xbf16>
    %73 = arith.truncf %58 : vector<8x16xf32> to vector<8x16xbf16>
    %cst_22 = arith.constant dense<0.000000e+00> : vector<8x16xf32>
    %74 = tpu.matmul %72, %73, %cst_22 {dimension_numbers = #tpu.dot_dimension_numbers<[1], [0], [0], [1], [0, 0, 1, 1], [], []>} : vector<8x8xbf16>, vector<8x16xbf16>, vector<8x16xf32> -> vector<8x16xf32>
    %75 = tpu.concatenate %55, %74 in 1 : vector<8x16xf32>, vector<8x16xf32> -> vector<8x32xf32>
    %76 = arith.truncf %75 : vector<8x32xf32> to vector<8x32xbf16>
    %cst_23 = arith.constant dense<0.000000e+00> : vector<8x32xf32>
    %77 = tpu.matmul %76, %12, %cst_23 {dimension_numbers = #tpu.dot_dimension_numbers<[1], [0], [0], [1], [0, 0, 1, 1], [], []>} : vector<8x32xbf16>, vector<32x32xbf16>, vector<8x32xf32> -> vector<8x32xf32>
    %78 = vector.broadcast %18 : vector<1x32xf32> to vector<8x32xf32>
    %79 = arith.addf %77, %78 : vector<8x32xf32>
    %80 = arith.addf %1, %79 : vector<8x32xf32>
    %cst_24 = arith.constant dense<0.000000e+00> : vector<8xf32>
    %81 = vector.multi_reduction <add>, %80, %cst_24 [1] : vector<8x32xf32> to vector<8xf32>
    %82 = vector.shape_cast %81 : vector<8xf32> to vector<8x1xf32>
    %cst_25 = arith.constant 3.200000e+01 : f32
    %83 = vector.broadcast %cst_25 : f32 to vector<8x1xf32>
    %84 = arith.divf %82, %83 : vector<8x1xf32>
    %85 = arith.mulf %80, %80 : vector<8x32xf32>
    %cst_26 = arith.constant dense<0.000000e+00> : vector<8xf32>
    %86 = vector.multi_reduction <add>, %85, %cst_26 [1] : vector<8x32xf32> to vector<8xf32>
    %87 = vector.shape_cast %86 : vector<8xf32> to vector<8x1xf32>
    %cst_27 = arith.constant 3.200000e+01 : f32
    %88 = vector.broadcast %cst_27 : f32 to vector<8x1xf32>
    %89 = arith.divf %87, %88 : vector<8x1xf32>
    %90 = arith.mulf %84, %84 : vector<8x1xf32>
    %91 = arith.subf %89, %90 : vector<8x1xf32>
    %92 = vector.broadcast %84 : vector<8x1xf32> to vector<8x32xf32>
    %93 = arith.subf %80, %92 : vector<8x32xf32>
    %cst_28 = arith.constant 9.99999974E-6 : f32
    %94 = vector.broadcast %cst_28 : f32 to vector<8x1xf32>
    %95 = arith.addf %91, %94 : vector<8x1xf32>
    %96 = math.rsqrt %95 : vector<8x1xf32>
    %97 = vector.broadcast %96 : vector<8x1xf32> to vector<8x32xf32>
    %98 = arith.mulf %93, %97 : vector<8x32xf32>
    %99 = vector.broadcast %22 : vector<1x32xf32> to vector<8x32xf32>
    %100 = arith.mulf %98, %99 : vector<8x32xf32>
    %101 = vector.broadcast %23 : vector<1x32xf32> to vector<8x32xf32>
    %102 = arith.addf %100, %101 : vector<8x32xf32>
    %103 = arith.truncf %102 : vector<8x32xf32> to vector<8x32xbf16>
    %cst_29 = arith.constant dense<0.000000e+00> : vector<8x32xf32>
    %104 = tpu.matmul %103, %13, %cst_29 {dimension_numbers = #tpu.dot_dimension_numbers<[1], [0], [0], [1], [0, 0, 1, 1], [], []>} : vector<8x32xbf16>, vector<32x32xbf16>, vector<8x32xf32> -> vector<8x32xf32>
    %105 = vector.broadcast %19 : vector<1x32xf32> to vector<8x32xf32>
    %106 = arith.addf %104, %105 : vector<8x32xf32>
    %107 = vector.extract_strided_slice %106 {offsets = [0, 0], sizes = [8, 16], strides = [1, 1]} : vector<8x32xf32> to vector<8x16xf32>
    %108 = vector.extract_strided_slice %32 {offsets = [0, 0], sizes = [12, 16], strides = [1, 1]} : vector<12x64xf32> to vector<12x16xf32>
    %109 = vector.extract_strided_slice %32 {offsets = [0, 32], sizes = [12, 16], strides = [1, 1]} : vector<12x64xf32> to vector<12x16xf32>
    %110 = arith.truncf %107 : vector<8x16xf32> to vector<8x16xbf16>
    %111 = arith.truncf %108 : vector<12x16xf32> to vector<12x16xbf16>
    %cst_30 = arith.constant dense<0.000000e+00> : vector<8x12xf32>
    %112 = tpu.matmul %110, %111, %cst_30 {dimension_numbers = #tpu.dot_dimension_numbers<[1], [1], [0], [0], [0, 0, 1, 0], [], []>} : vector<8x16xbf16>, vector<12x16xbf16>, vector<8x12xf32> -> vector<8x12xf32>
    %cst_31 = arith.constant dense<0xFF800000> : vector<8xf32>
    %113 = vector.multi_reduction <maximumf>, %112, %cst_31 [1] : vector<8x12xf32> to vector<8xf32>
    %114 = vector.shape_cast %113 : vector<8xf32> to vector<8x1xf32>
    %115 = vector.broadcast %114 : vector<8x1xf32> to vector<8x12xf32>
    %116 = arith.subf %112, %115 : vector<8x12xf32>
    %117 = math.exp %116 : vector<8x12xf32>
    %cst_32 = arith.constant dense<0.000000e+00> : vector<8xf32>
    %118 = vector.multi_reduction <add>, %117, %cst_32 [1] : vector<8x12xf32> to vector<8xf32>
    %119 = vector.shape_cast %118 : vector<8xf32> to vector<8x1xf32>
    %120 = tpu.reciprocal %119 {approx = true} : vector<8x1xf32> -> vector<8x1xf32>
    %121 = vector.broadcast %120 : vector<8x1xf32> to vector<8x12xf32>
    %122 = arith.mulf %117, %121 : vector<8x12xf32>
    %123 = arith.truncf %122 : vector<8x12xf32> to vector<8x12xbf16>
    %124 = arith.truncf %109 : vector<12x16xf32> to vector<12x16xbf16>
    %cst_33 = arith.constant dense<0.000000e+00> : vector<8x16xf32>
    %125 = tpu.matmul %123, %124, %cst_33 {dimension_numbers = #tpu.dot_dimension_numbers<[1], [0], [0], [1], [0, 0, 1, 1], [], []>} : vector<8x12xbf16>, vector<12x16xbf16>, vector<8x16xf32> -> vector<8x16xf32>
    %126 = vector.extract_strided_slice %106 {offsets = [0, 16], sizes = [8, 16], strides = [1, 1]} : vector<8x32xf32> to vector<8x16xf32>
    %127 = vector.extract_strided_slice %32 {offsets = [0, 16], sizes = [12, 16], strides = [1, 1]} : vector<12x64xf32> to vector<12x16xf32>
    %128 = vector.extract_strided_slice %32 {offsets = [0, 48], sizes = [12, 16], strides = [1, 1]} : vector<12x64xf32> to vector<12x16xf32>
    %129 = arith.truncf %126 : vector<8x16xf32> to vector<8x16xbf16>
    %130 = arith.truncf %127 : vector<12x16xf32> to vector<12x16xbf16>
    %cst_34 = arith.constant dense<0.000000e+00> : vector<8x12xf32>
    %131 = tpu.matmul %129, %130, %cst_34 {dimension_numbers = #tpu.dot_dimension_numbers<[1], [1], [0], [0], [0, 0, 1, 0], [], []>} : vector<8x16xbf16>, vector<12x16xbf16>, vector<8x12xf32> -> vector<8x12xf32>
    %cst_35 = arith.constant dense<0xFF800000> : vector<8xf32>
    %132 = vector.multi_reduction <maximumf>, %131, %cst_35 [1] : vector<8x12xf32> to vector<8xf32>
    %133 = vector.shape_cast %132 : vector<8xf32> to vector<8x1xf32>
    %134 = vector.broadcast %133 : vector<8x1xf32> to vector<8x12xf32>
    %135 = arith.subf %131, %134 : vector<8x12xf32>
    %136 = math.exp %135 : vector<8x12xf32>
    %cst_36 = arith.constant dense<0.000000e+00> : vector<8xf32>
    %137 = vector.multi_reduction <add>, %136, %cst_36 [1] : vector<8x12xf32> to vector<8xf32>
    %138 = vector.shape_cast %137 : vector<8xf32> to vector<8x1xf32>
    %139 = tpu.reciprocal %138 {approx = true} : vector<8x1xf32> -> vector<8x1xf32>
    %140 = vector.broadcast %139 : vector<8x1xf32> to vector<8x12xf32>
    %141 = arith.mulf %136, %140 : vector<8x12xf32>
    %142 = arith.truncf %141 : vector<8x12xf32> to vector<8x12xbf16>
    %143 = arith.truncf %128 : vector<12x16xf32> to vector<12x16xbf16>
    %cst_37 = arith.constant dense<0.000000e+00> : vector<8x16xf32>
    %144 = tpu.matmul %142, %143, %cst_37 {dimension_numbers = #tpu.dot_dimension_numbers<[1], [0], [0], [1], [0, 0, 1, 1], [], []>} : vector<8x12xbf16>, vector<12x16xbf16>, vector<8x16xf32> -> vector<8x16xf32>
    %145 = tpu.concatenate %125, %144 in 1 : vector<8x16xf32>, vector<8x16xf32> -> vector<8x32xf32>
    %146 = arith.truncf %145 : vector<8x32xf32> to vector<8x32xbf16>
    %cst_38 = arith.constant dense<0.000000e+00> : vector<8x32xf32>
    %147 = tpu.matmul %146, %15, %cst_38 {dimension_numbers = #tpu.dot_dimension_numbers<[1], [0], [0], [1], [0, 0, 1, 1], [], []>} : vector<8x32xbf16>, vector<32x32xbf16>, vector<8x32xf32> -> vector<8x32xf32>
    %148 = vector.broadcast %21 : vector<1x32xf32> to vector<8x32xf32>
    %149 = arith.addf %147, %148 : vector<8x32xf32>
    %150 = arith.addf %102, %149 : vector<8x32xf32>
    %cst_39 = arith.constant dense<0.000000e+00> : vector<8xf32>
    %151 = vector.multi_reduction <add>, %150, %cst_39 [1] : vector<8x32xf32> to vector<8xf32>
    %152 = vector.shape_cast %151 : vector<8xf32> to vector<8x1xf32>
    %cst_40 = arith.constant 3.200000e+01 : f32
    %153 = vector.broadcast %cst_40 : f32 to vector<8x1xf32>
    %154 = arith.divf %152, %153 : vector<8x1xf32>
    %155 = arith.mulf %150, %150 : vector<8x32xf32>
    %cst_41 = arith.constant dense<0.000000e+00> : vector<8xf32>
    %156 = vector.multi_reduction <add>, %155, %cst_41 [1] : vector<8x32xf32> to vector<8xf32>
    %157 = vector.shape_cast %156 : vector<8xf32> to vector<8x1xf32>
    %cst_42 = arith.constant 3.200000e+01 : f32
    %158 = vector.broadcast %cst_42 : f32 to vector<8x1xf32>
    %159 = arith.divf %157, %158 : vector<8x1xf32>
    %160 = arith.mulf %154, %154 : vector<8x1xf32>
    %161 = arith.subf %159, %160 : vector<8x1xf32>
    %162 = vector.broadcast %154 : vector<8x1xf32> to vector<8x32xf32>
    %163 = arith.subf %150, %162 : vector<8x32xf32>
    %cst_43 = arith.constant 9.99999974E-6 : f32
    %164 = vector.broadcast %cst_43 : f32 to vector<8x1xf32>
    %165 = arith.addf %161, %164 : vector<8x1xf32>
    %166 = math.rsqrt %165 : vector<8x1xf32>
    %167 = vector.broadcast %166 : vector<8x1xf32> to vector<8x32xf32>
    %168 = arith.mulf %163, %167 : vector<8x32xf32>
    %169 = vector.broadcast %24 : vector<1x32xf32> to vector<8x32xf32>
    %170 = arith.mulf %168, %169 : vector<8x32xf32>
    %171 = vector.broadcast %25 : vector<1x32xf32> to vector<8x32xf32>
    %172 = arith.addf %170, %171 : vector<8x32xf32>
    %173 = arith.truncf %172 : vector<8x32xf32> to vector<8x32xbf16>
    %cst_44 = arith.constant dense<0.000000e+00> : vector<8x64xf32>
    %174 = tpu.matmul %173, %16, %cst_44 {dimension_numbers = #tpu.dot_dimension_numbers<[1], [0], [0], [1], [0, 0, 1, 1], [], []>} : vector<8x32xbf16>, vector<32x64xbf16>, vector<8x64xf32> -> vector<8x64xf32>
    %175 = vector.broadcast %26 : vector<1x64xf32> to vector<8x64xf32>
    %176 = arith.addf %174, %175 : vector<8x64xf32>
    %cst_45 = arith.constant 0.000000e+00 : f32
    %177 = vector.broadcast %cst_45 : f32 to vector<8x64xf32>
    %178 = arith.maximumf %176, %177 : vector<8x64xf32>
    %179 = arith.truncf %178 : vector<8x64xf32> to vector<8x64xbf16>
    %cst_46 = arith.constant dense<0.000000e+00> : vector<8x32xf32>
    %180 = tpu.matmul %179, %8, %cst_46 {dimension_numbers = #tpu.dot_dimension_numbers<[1], [0], [0], [1], [0, 0, 1, 1], [], []>} : vector<8x64xbf16>, vector<64x32xbf16>, vector<8x32xf32> -> vector<8x32xf32>
    %181 = vector.broadcast %27 : vector<1x32xf32> to vector<8x32xf32>
    %182 = arith.addf %180, %181 : vector<8x32xf32>
    %183 = arith.addf %172, %182 : vector<8x32xf32>
    %cst_47 = arith.constant dense<0.000000e+00> : vector<8xf32>
    %184 = vector.multi_reduction <add>, %183, %cst_47 [1] : vector<8x32xf32> to vector<8xf32>
    %185 = vector.shape_cast %184 : vector<8xf32> to vector<8x1xf32>
    %cst_48 = arith.constant 3.200000e+01 : f32
    %186 = vector.broadcast %cst_48 : f32 to vector<8x1xf32>
    %187 = arith.divf %185, %186 : vector<8x1xf32>
    %188 = arith.mulf %183, %183 : vector<8x32xf32>
    %cst_49 = arith.constant dense<0.000000e+00> : vector<8xf32>
    %189 = vector.multi_reduction <add>, %188, %cst_49 [1] : vector<8x32xf32> to vector<8xf32>
    %190 = vector.shape_cast %189 : vector<8xf32> to vector<8x1xf32>
    %cst_50 = arith.constant 3.200000e+01 : f32
    %191 = vector.broadcast %cst_50 : f32 to vector<8x1xf32>
    %192 = arith.divf %190, %191 : vector<8x1xf32>
    %193 = arith.mulf %187, %187 : vector<8x1xf32>
    %194 = arith.subf %192, %193 : vector<8x1xf32>
    %195 = vector.broadcast %187 : vector<8x1xf32> to vector<8x32xf32>
    %196 = arith.subf %183, %195 : vector<8x32xf32>
    %cst_51 = arith.constant 9.99999974E-6 : f32
    %197 = vector.broadcast %cst_51 : f32 to vector<8x1xf32>
    %198 = arith.addf %194, %197 : vector<8x1xf32>
    %199 = math.rsqrt %198 : vector<8x1xf32>
    %200 = vector.broadcast %199 : vector<8x1xf32> to vector<8x32xf32>
    %201 = arith.mulf %196, %200 : vector<8x32xf32>
    %202 = vector.broadcast %28 : vector<1x32xf32> to vector<8x32xf32>
    %203 = arith.mulf %201, %202 : vector<8x32xf32>
    %204 = vector.broadcast %29 : vector<1x32xf32> to vector<8x32xf32>
    %205 = arith.addf %203, %204 : vector<8x32xf32>
    %c1 = arith.constant 1 : index
    %c0_52 = arith.constant 0 : index
    %c0_53 = arith.constant 0 : index
    %206 = vector.load %arg3[%c1, %c0_52, %c0_53] : memref<2x32x320xbf16, #tpu.memory_space<vmem>>, vector<1x32x320xbf16>
    %207 = vector.shape_cast %206 : vector<1x32x320xbf16> to vector<32x320xbf16>
    %c1_54 = arith.constant 1 : index
    %c0_55 = arith.constant 0 : index
    %c0_56 = arith.constant 0 : index
    %208 = vector.load %arg4[%c1_54, %c0_55, %c0_56] : memref<2x64x32xbf16, #tpu.memory_space<vmem>>, vector<1x64x32xbf16>
    %209 = vector.shape_cast %208 : vector<1x64x32xbf16> to vector<64x32xbf16>
    %c1_57 = arith.constant 1 : index
    %c0_58 = arith.constant 0 : index
    %c0_59 = arith.constant 0 : index
    %210 = vector.load %arg5[%c1_57, %c0_58, %c0_59] : memref<2x13x96xf32, #tpu.memory_space<vmem>>, vector<1x13x96xf32>
    %211 = vector.shape_cast %210 : vector<1x13x96xf32> to vector<13x96xf32>
    %212 = vector.extract_strided_slice %207 {offsets = [0, 0], sizes = [32, 96], strides = [1, 1]} : vector<32x320xbf16> to vector<32x96xbf16>
    %213 = vector.extract_strided_slice %207 {offsets = [0, 96], sizes = [32, 32], strides = [1, 1]} : vector<32x320xbf16> to vector<32x32xbf16>
    %214 = vector.extract_strided_slice %207 {offsets = [0, 128], sizes = [32, 32], strides = [1, 1]} : vector<32x320xbf16> to vector<32x32xbf16>
    %215 = vector.extract_strided_slice %207 {offsets = [0, 160], sizes = [32, 64], strides = [1, 1]} : vector<32x320xbf16> to vector<32x64xbf16>
    %216 = vector.extract_strided_slice %207 {offsets = [0, 224], sizes = [32, 32], strides = [1, 1]} : vector<32x320xbf16> to vector<32x32xbf16>
    %217 = vector.extract_strided_slice %207 {offsets = [0, 256], sizes = [32, 64], strides = [1, 1]} : vector<32x320xbf16> to vector<32x64xbf16>
    %218 = vector.extract_strided_slice %211 {offsets = [0, 0], sizes = [1, 96], strides = [1, 1]} : vector<13x96xf32> to vector<1x96xf32>
    %219 = vector.extract_strided_slice %211 {offsets = [1, 0], sizes = [1, 32], strides = [1, 1]} : vector<13x96xf32> to vector<1x32xf32>
    %220 = vector.extract_strided_slice %211 {offsets = [2, 0], sizes = [1, 32], strides = [1, 1]} : vector<13x96xf32> to vector<1x32xf32>
    %221 = vector.extract_strided_slice %211 {offsets = [3, 0], sizes = [1, 64], strides = [1, 1]} : vector<13x96xf32> to vector<1x64xf32>
    %222 = vector.extract_strided_slice %211 {offsets = [4, 0], sizes = [1, 32], strides = [1, 1]} : vector<13x96xf32> to vector<1x32xf32>
    %223 = vector.extract_strided_slice %211 {offsets = [5, 0], sizes = [1, 32], strides = [1, 1]} : vector<13x96xf32> to vector<1x32xf32>
    %224 = vector.extract_strided_slice %211 {offsets = [6, 0], sizes = [1, 32], strides = [1, 1]} : vector<13x96xf32> to vector<1x32xf32>
    %225 = vector.extract_strided_slice %211 {offsets = [7, 0], sizes = [1, 32], strides = [1, 1]} : vector<13x96xf32> to vector<1x32xf32>
    %226 = vector.extract_strided_slice %211 {offsets = [8, 0], sizes = [1, 32], strides = [1, 1]} : vector<13x96xf32> to vector<1x32xf32>
    %227 = vector.extract_strided_slice %211 {offsets = [9, 0], sizes = [1, 64], strides = [1, 1]} : vector<13x96xf32> to vector<1x64xf32>
    %228 = vector.extract_strided_slice %211 {offsets = [10, 0], sizes = [1, 32], strides = [1, 1]} : vector<13x96xf32> to vector<1x32xf32>
    %229 = vector.extract_strided_slice %211 {offsets = [11, 0], sizes = [1, 32], strides = [1, 1]} : vector<13x96xf32> to vector<1x32xf32>
    %230 = vector.extract_strided_slice %211 {offsets = [12, 0], sizes = [1, 32], strides = [1, 1]} : vector<13x96xf32> to vector<1x32xf32>
    %cst_60 = arith.constant dense<0.000000e+00> : vector<12x64xf32>
    %231 = tpu.matmul %4, %215, %cst_60 {dimension_numbers = #tpu.dot_dimension_numbers<[1], [0], [0], [1], [0, 0, 1, 1], [], []>} : vector<12x32xbf16>, vector<32x64xbf16>, vector<12x64xf32> -> vector<12x64xf32>
    %232 = vector.broadcast %221 : vector<1x64xf32> to vector<12x64xf32>
    %233 = arith.addf %231, %232 : vector<12x64xf32>
    %234 = arith.truncf %205 : vector<8x32xf32> to vector<8x32xbf16>
    %cst_61 = arith.constant dense<0.000000e+00> : vector<8x96xf32>
    %235 = tpu.matmul %234, %212, %cst_61 {dimension_numbers = #tpu.dot_dimension_numbers<[1], [0], [0], [1], [0, 0, 1, 1], [], []>} : vector<8x32xbf16>, vector<32x96xbf16>, vector<8x96xf32> -> vector<8x96xf32>
    %236 = vector.broadcast %218 : vector<1x96xf32> to vector<8x96xf32>
    %237 = arith.addf %235, %236 : vector<8x96xf32>
    %238 = vector.extract_strided_slice %237 {offsets = [0, 0], sizes = [8, 16], strides = [1, 1]} : vector<8x96xf32> to vector<8x16xf32>
    %239 = vector.extract_strided_slice %237 {offsets = [0, 32], sizes = [8, 16], strides = [1, 1]} : vector<8x96xf32> to vector<8x16xf32>
    %240 = vector.extract_strided_slice %237 {offsets = [0, 64], sizes = [8, 16], strides = [1, 1]} : vector<8x96xf32> to vector<8x16xf32>
    %241 = arith.truncf %238 : vector<8x16xf32> to vector<8x16xbf16>
    %242 = arith.truncf %239 : vector<8x16xf32> to vector<8x16xbf16>
    %cst_62 = arith.constant dense<0.000000e+00> : vector<8x8xf32>
    %243 = tpu.matmul %241, %242, %cst_62 {dimension_numbers = #tpu.dot_dimension_numbers<[1], [1], [0], [0], [0, 0, 1, 0], [], []>} : vector<8x16xbf16>, vector<8x16xbf16>, vector<8x8xf32> -> vector<8x8xf32>
    %cst_63 = arith.constant dense<0xFF800000> : vector<8xf32>
    %244 = vector.multi_reduction <maximumf>, %243, %cst_63 [1] : vector<8x8xf32> to vector<8xf32>
    %245 = vector.shape_cast %244 : vector<8xf32> to vector<8x1xf32>
    %246 = vector.broadcast %245 : vector<8x1xf32> to vector<8x8xf32>
    %247 = arith.subf %243, %246 : vector<8x8xf32>
    %248 = math.exp %247 : vector<8x8xf32>
    %cst_64 = arith.constant dense<0.000000e+00> : vector<8xf32>
    %249 = vector.multi_reduction <add>, %248, %cst_64 [1] : vector<8x8xf32> to vector<8xf32>
    %250 = vector.shape_cast %249 : vector<8xf32> to vector<8x1xf32>
    %251 = tpu.reciprocal %250 {approx = true} : vector<8x1xf32> -> vector<8x1xf32>
    %252 = vector.broadcast %251 : vector<8x1xf32> to vector<8x8xf32>
    %253 = arith.mulf %248, %252 : vector<8x8xf32>
    %254 = arith.truncf %253 : vector<8x8xf32> to vector<8x8xbf16>
    %255 = arith.truncf %240 : vector<8x16xf32> to vector<8x16xbf16>
    %cst_65 = arith.constant dense<0.000000e+00> : vector<8x16xf32>
    %256 = tpu.matmul %254, %255, %cst_65 {dimension_numbers = #tpu.dot_dimension_numbers<[1], [0], [0], [1], [0, 0, 1, 1], [], []>} : vector<8x8xbf16>, vector<8x16xbf16>, vector<8x16xf32> -> vector<8x16xf32>
    %257 = vector.extract_strided_slice %237 {offsets = [0, 16], sizes = [8, 16], strides = [1, 1]} : vector<8x96xf32> to vector<8x16xf32>
    %258 = vector.extract_strided_slice %237 {offsets = [0, 48], sizes = [8, 16], strides = [1, 1]} : vector<8x96xf32> to vector<8x16xf32>
    %259 = vector.extract_strided_slice %237 {offsets = [0, 80], sizes = [8, 16], strides = [1, 1]} : vector<8x96xf32> to vector<8x16xf32>
    %260 = arith.truncf %257 : vector<8x16xf32> to vector<8x16xbf16>
    %261 = arith.truncf %258 : vector<8x16xf32> to vector<8x16xbf16>
    %cst_66 = arith.constant dense<0.000000e+00> : vector<8x8xf32>
    %262 = tpu.matmul %260, %261, %cst_66 {dimension_numbers = #tpu.dot_dimension_numbers<[1], [1], [0], [0], [0, 0, 1, 0], [], []>} : vector<8x16xbf16>, vector<8x16xbf16>, vector<8x8xf32> -> vector<8x8xf32>
    %cst_67 = arith.constant dense<0xFF800000> : vector<8xf32>
    %263 = vector.multi_reduction <maximumf>, %262, %cst_67 [1] : vector<8x8xf32> to vector<8xf32>
    %264 = vector.shape_cast %263 : vector<8xf32> to vector<8x1xf32>
    %265 = vector.broadcast %264 : vector<8x1xf32> to vector<8x8xf32>
    %266 = arith.subf %262, %265 : vector<8x8xf32>
    %267 = math.exp %266 : vector<8x8xf32>
    %cst_68 = arith.constant dense<0.000000e+00> : vector<8xf32>
    %268 = vector.multi_reduction <add>, %267, %cst_68 [1] : vector<8x8xf32> to vector<8xf32>
    %269 = vector.shape_cast %268 : vector<8xf32> to vector<8x1xf32>
    %270 = tpu.reciprocal %269 {approx = true} : vector<8x1xf32> -> vector<8x1xf32>
    %271 = vector.broadcast %270 : vector<8x1xf32> to vector<8x8xf32>
    %272 = arith.mulf %267, %271 : vector<8x8xf32>
    %273 = arith.truncf %272 : vector<8x8xf32> to vector<8x8xbf16>
    %274 = arith.truncf %259 : vector<8x16xf32> to vector<8x16xbf16>
    %cst_69 = arith.constant dense<0.000000e+00> : vector<8x16xf32>
    %275 = tpu.matmul %273, %274, %cst_69 {dimension_numbers = #tpu.dot_dimension_numbers<[1], [0], [0], [1], [0, 0, 1, 1], [], []>} : vector<8x8xbf16>, vector<8x16xbf16>, vector<8x16xf32> -> vector<8x16xf32>
    %276 = tpu.concatenate %256, %275 in 1 : vector<8x16xf32>, vector<8x16xf32> -> vector<8x32xf32>
    %277 = arith.truncf %276 : vector<8x32xf32> to vector<8x32xbf16>
    %cst_70 = arith.constant dense<0.000000e+00> : vector<8x32xf32>
    %278 = tpu.matmul %277, %213, %cst_70 {dimension_numbers = #tpu.dot_dimension_numbers<[1], [0], [0], [1], [0, 0, 1, 1], [], []>} : vector<8x32xbf16>, vector<32x32xbf16>, vector<8x32xf32> -> vector<8x32xf32>
    %279 = vector.broadcast %219 : vector<1x32xf32> to vector<8x32xf32>
    %280 = arith.addf %278, %279 : vector<8x32xf32>
    %281 = arith.addf %205, %280 : vector<8x32xf32>
    %cst_71 = arith.constant dense<0.000000e+00> : vector<8xf32>
    %282 = vector.multi_reduction <add>, %281, %cst_71 [1] : vector<8x32xf32> to vector<8xf32>
    %283 = vector.shape_cast %282 : vector<8xf32> to vector<8x1xf32>
    %cst_72 = arith.constant 3.200000e+01 : f32
    %284 = vector.broadcast %cst_72 : f32 to vector<8x1xf32>
    %285 = arith.divf %283, %284 : vector<8x1xf32>
    %286 = arith.mulf %281, %281 : vector<8x32xf32>
    %cst_73 = arith.constant dense<0.000000e+00> : vector<8xf32>
    %287 = vector.multi_reduction <add>, %286, %cst_73 [1] : vector<8x32xf32> to vector<8xf32>
    %288 = vector.shape_cast %287 : vector<8xf32> to vector<8x1xf32>
    %cst_74 = arith.constant 3.200000e+01 : f32
    %289 = vector.broadcast %cst_74 : f32 to vector<8x1xf32>
    %290 = arith.divf %288, %289 : vector<8x1xf32>
    %291 = arith.mulf %285, %285 : vector<8x1xf32>
    %292 = arith.subf %290, %291 : vector<8x1xf32>
    %293 = vector.broadcast %285 : vector<8x1xf32> to vector<8x32xf32>
    %294 = arith.subf %281, %293 : vector<8x32xf32>
    %cst_75 = arith.constant 9.99999974E-6 : f32
    %295 = vector.broadcast %cst_75 : f32 to vector<8x1xf32>
    %296 = arith.addf %292, %295 : vector<8x1xf32>
    %297 = math.rsqrt %296 : vector<8x1xf32>
    %298 = vector.broadcast %297 : vector<8x1xf32> to vector<8x32xf32>
    %299 = arith.mulf %294, %298 : vector<8x32xf32>
    %300 = vector.broadcast %223 : vector<1x32xf32> to vector<8x32xf32>
    %301 = arith.mulf %299, %300 : vector<8x32xf32>
    %302 = vector.broadcast %224 : vector<1x32xf32> to vector<8x32xf32>
    %303 = arith.addf %301, %302 : vector<8x32xf32>
    %304 = arith.truncf %303 : vector<8x32xf32> to vector<8x32xbf16>
    %cst_76 = arith.constant dense<0.000000e+00> : vector<8x32xf32>
    %305 = tpu.matmul %304, %214, %cst_76 {dimension_numbers = #tpu.dot_dimension_numbers<[1], [0], [0], [1], [0, 0, 1, 1], [], []>} : vector<8x32xbf16>, vector<32x32xbf16>, vector<8x32xf32> -> vector<8x32xf32>
    %306 = vector.broadcast %220 : vector<1x32xf32> to vector<8x32xf32>
    %307 = arith.addf %305, %306 : vector<8x32xf32>
    %308 = vector.extract_strided_slice %307 {offsets = [0, 0], sizes = [8, 16], strides = [1, 1]} : vector<8x32xf32> to vector<8x16xf32>
    %309 = vector.extract_strided_slice %233 {offsets = [0, 0], sizes = [12, 16], strides = [1, 1]} : vector<12x64xf32> to vector<12x16xf32>
    %310 = vector.extract_strided_slice %233 {offsets = [0, 32], sizes = [12, 16], strides = [1, 1]} : vector<12x64xf32> to vector<12x16xf32>
    %311 = arith.truncf %308 : vector<8x16xf32> to vector<8x16xbf16>
    %312 = arith.truncf %309 : vector<12x16xf32> to vector<12x16xbf16>
    %cst_77 = arith.constant dense<0.000000e+00> : vector<8x12xf32>
    %313 = tpu.matmul %311, %312, %cst_77 {dimension_numbers = #tpu.dot_dimension_numbers<[1], [1], [0], [0], [0, 0, 1, 0], [], []>} : vector<8x16xbf16>, vector<12x16xbf16>, vector<8x12xf32> -> vector<8x12xf32>
    %cst_78 = arith.constant dense<0xFF800000> : vector<8xf32>
    %314 = vector.multi_reduction <maximumf>, %313, %cst_78 [1] : vector<8x12xf32> to vector<8xf32>
    %315 = vector.shape_cast %314 : vector<8xf32> to vector<8x1xf32>
    %316 = vector.broadcast %315 : vector<8x1xf32> to vector<8x12xf32>
    %317 = arith.subf %313, %316 : vector<8x12xf32>
    %318 = math.exp %317 : vector<8x12xf32>
    %cst_79 = arith.constant dense<0.000000e+00> : vector<8xf32>
    %319 = vector.multi_reduction <add>, %318, %cst_79 [1] : vector<8x12xf32> to vector<8xf32>
    %320 = vector.shape_cast %319 : vector<8xf32> to vector<8x1xf32>
    %321 = tpu.reciprocal %320 {approx = true} : vector<8x1xf32> -> vector<8x1xf32>
    %322 = vector.broadcast %321 : vector<8x1xf32> to vector<8x12xf32>
    %323 = arith.mulf %318, %322 : vector<8x12xf32>
    %324 = arith.truncf %323 : vector<8x12xf32> to vector<8x12xbf16>
    %325 = arith.truncf %310 : vector<12x16xf32> to vector<12x16xbf16>
    %cst_80 = arith.constant dense<0.000000e+00> : vector<8x16xf32>
    %326 = tpu.matmul %324, %325, %cst_80 {dimension_numbers = #tpu.dot_dimension_numbers<[1], [0], [0], [1], [0, 0, 1, 1], [], []>} : vector<8x12xbf16>, vector<12x16xbf16>, vector<8x16xf32> -> vector<8x16xf32>
    %327 = vector.extract_strided_slice %307 {offsets = [0, 16], sizes = [8, 16], strides = [1, 1]} : vector<8x32xf32> to vector<8x16xf32>
    %328 = vector.extract_strided_slice %233 {offsets = [0, 16], sizes = [12, 16], strides = [1, 1]} : vector<12x64xf32> to vector<12x16xf32>
    %329 = vector.extract_strided_slice %233 {offsets = [0, 48], sizes = [12, 16], strides = [1, 1]} : vector<12x64xf32> to vector<12x16xf32>
    %330 = arith.truncf %327 : vector<8x16xf32> to vector<8x16xbf16>
    %331 = arith.truncf %328 : vector<12x16xf32> to vector<12x16xbf16>
    %cst_81 = arith.constant dense<0.000000e+00> : vector<8x12xf32>
    %332 = tpu.matmul %330, %331, %cst_81 {dimension_numbers = #tpu.dot_dimension_numbers<[1], [1], [0], [0], [0, 0, 1, 0], [], []>} : vector<8x16xbf16>, vector<12x16xbf16>, vector<8x12xf32> -> vector<8x12xf32>
    %cst_82 = arith.constant dense<0xFF800000> : vector<8xf32>
    %333 = vector.multi_reduction <maximumf>, %332, %cst_82 [1] : vector<8x12xf32> to vector<8xf32>
    %334 = vector.shape_cast %333 : vector<8xf32> to vector<8x1xf32>
    %335 = vector.broadcast %334 : vector<8x1xf32> to vector<8x12xf32>
    %336 = arith.subf %332, %335 : vector<8x12xf32>
    %337 = math.exp %336 : vector<8x12xf32>
    %cst_83 = arith.constant dense<0.000000e+00> : vector<8xf32>
    %338 = vector.multi_reduction <add>, %337, %cst_83 [1] : vector<8x12xf32> to vector<8xf32>
    %339 = vector.shape_cast %338 : vector<8xf32> to vector<8x1xf32>
    %340 = tpu.reciprocal %339 {approx = true} : vector<8x1xf32> -> vector<8x1xf32>
    %341 = vector.broadcast %340 : vector<8x1xf32> to vector<8x12xf32>
    %342 = arith.mulf %337, %341 : vector<8x12xf32>
    %343 = arith.truncf %342 : vector<8x12xf32> to vector<8x12xbf16>
    %344 = arith.truncf %329 : vector<12x16xf32> to vector<12x16xbf16>
    %cst_84 = arith.constant dense<0.000000e+00> : vector<8x16xf32>
    %345 = tpu.matmul %343, %344, %cst_84 {dimension_numbers = #tpu.dot_dimension_numbers<[1], [0], [0], [1], [0, 0, 1, 1], [], []>} : vector<8x12xbf16>, vector<12x16xbf16>, vector<8x16xf32> -> vector<8x16xf32>
    %346 = tpu.concatenate %326, %345 in 1 : vector<8x16xf32>, vector<8x16xf32> -> vector<8x32xf32>
    %347 = arith.truncf %346 : vector<8x32xf32> to vector<8x32xbf16>
    %cst_85 = arith.constant dense<0.000000e+00> : vector<8x32xf32>
    %348 = tpu.matmul %347, %216, %cst_85 {dimension_numbers = #tpu.dot_dimension_numbers<[1], [0], [0], [1], [0, 0, 1, 1], [], []>} : vector<8x32xbf16>, vector<32x32xbf16>, vector<8x32xf32> -> vector<8x32xf32>
    %349 = vector.broadcast %222 : vector<1x32xf32> to vector<8x32xf32>
    %350 = arith.addf %348, %349 : vector<8x32xf32>
    %351 = arith.addf %303, %350 : vector<8x32xf32>
    %cst_86 = arith.constant dense<0.000000e+00> : vector<8xf32>
    %352 = vector.multi_reduction <add>, %351, %cst_86 [1] : vector<8x32xf32> to vector<8xf32>
    %353 = vector.shape_cast %352 : vector<8xf32> to vector<8x1xf32>
    %cst_87 = arith.constant 3.200000e+01 : f32
    %354 = vector.broadcast %cst_87 : f32 to vector<8x1xf32>
    %355 = arith.divf %353, %354 : vector<8x1xf32>
    %356 = arith.mulf %351, %351 : vector<8x32xf32>
    %cst_88 = arith.constant dense<0.000000e+00> : vector<8xf32>
    %357 = vector.multi_reduction <add>, %356, %cst_88 [1] : vector<8x32xf32> to vector<8xf32>
    %358 = vector.shape_cast %357 : vector<8xf32> to vector<8x1xf32>
    %cst_89 = arith.constant 3.200000e+01 : f32
    %359 = vector.broadcast %cst_89 : f32 to vector<8x1xf32>
    %360 = arith.divf %358, %359 : vector<8x1xf32>
    %361 = arith.mulf %355, %355 : vector<8x1xf32>
    %362 = arith.subf %360, %361 : vector<8x1xf32>
    %363 = vector.broadcast %355 : vector<8x1xf32> to vector<8x32xf32>
    %364 = arith.subf %351, %363 : vector<8x32xf32>
    %cst_90 = arith.constant 9.99999974E-6 : f32
    %365 = vector.broadcast %cst_90 : f32 to vector<8x1xf32>
    %366 = arith.addf %362, %365 : vector<8x1xf32>
    %367 = math.rsqrt %366 : vector<8x1xf32>
    %368 = vector.broadcast %367 : vector<8x1xf32> to vector<8x32xf32>
    %369 = arith.mulf %364, %368 : vector<8x32xf32>
    %370 = vector.broadcast %225 : vector<1x32xf32> to vector<8x32xf32>
    %371 = arith.mulf %369, %370 : vector<8x32xf32>
    %372 = vector.broadcast %226 : vector<1x32xf32> to vector<8x32xf32>
    %373 = arith.addf %371, %372 : vector<8x32xf32>
    %374 = arith.truncf %373 : vector<8x32xf32> to vector<8x32xbf16>
    %cst_91 = arith.constant dense<0.000000e+00> : vector<8x64xf32>
    %375 = tpu.matmul %374, %217, %cst_91 {dimension_numbers = #tpu.dot_dimension_numbers<[1], [0], [0], [1], [0, 0, 1, 1], [], []>} : vector<8x32xbf16>, vector<32x64xbf16>, vector<8x64xf32> -> vector<8x64xf32>
    %376 = vector.broadcast %227 : vector<1x64xf32> to vector<8x64xf32>
    %377 = arith.addf %375, %376 : vector<8x64xf32>
    %cst_92 = arith.constant 0.000000e+00 : f32
    %378 = vector.broadcast %cst_92 : f32 to vector<8x64xf32>
    %379 = arith.maximumf %377, %378 : vector<8x64xf32>
    %380 = arith.truncf %379 : vector<8x64xf32> to vector<8x64xbf16>
    %cst_93 = arith.constant dense<0.000000e+00> : vector<8x32xf32>
    %381 = tpu.matmul %380, %209, %cst_93 {dimension_numbers = #tpu.dot_dimension_numbers<[1], [0], [0], [1], [0, 0, 1, 1], [], []>} : vector<8x64xbf16>, vector<64x32xbf16>, vector<8x32xf32> -> vector<8x32xf32>
    %382 = vector.broadcast %228 : vector<1x32xf32> to vector<8x32xf32>
    %383 = arith.addf %381, %382 : vector<8x32xf32>
    %384 = arith.addf %373, %383 : vector<8x32xf32>
    %cst_94 = arith.constant dense<0.000000e+00> : vector<8xf32>
    %385 = vector.multi_reduction <add>, %384, %cst_94 [1] : vector<8x32xf32> to vector<8xf32>
    %386 = vector.shape_cast %385 : vector<8xf32> to vector<8x1xf32>
    %cst_95 = arith.constant 3.200000e+01 : f32
    %387 = vector.broadcast %cst_95 : f32 to vector<8x1xf32>
    %388 = arith.divf %386, %387 : vector<8x1xf32>
    %389 = arith.mulf %384, %384 : vector<8x32xf32>
    %cst_96 = arith.constant dense<0.000000e+00> : vector<8xf32>
    %390 = vector.multi_reduction <add>, %389, %cst_96 [1] : vector<8x32xf32> to vector<8xf32>
    %391 = vector.shape_cast %390 : vector<8xf32> to vector<8x1xf32>
    %cst_97 = arith.constant 3.200000e+01 : f32
    %392 = vector.broadcast %cst_97 : f32 to vector<8x1xf32>
    %393 = arith.divf %391, %392 : vector<8x1xf32>
    %394 = arith.mulf %388, %388 : vector<8x1xf32>
    %395 = arith.subf %393, %394 : vector<8x1xf32>
    %396 = vector.broadcast %388 : vector<8x1xf32> to vector<8x32xf32>
    %397 = arith.subf %384, %396 : vector<8x32xf32>
    %cst_98 = arith.constant 9.99999974E-6 : f32
    %398 = vector.broadcast %cst_98 : f32 to vector<8x1xf32>
    %399 = arith.addf %395, %398 : vector<8x1xf32>
    %400 = math.rsqrt %399 : vector<8x1xf32>
    %401 = vector.broadcast %400 : vector<8x1xf32> to vector<8x32xf32>
    %402 = arith.mulf %397, %401 : vector<8x32xf32>
    %403 = vector.broadcast %229 : vector<1x32xf32> to vector<8x32xf32>
    %404 = arith.mulf %402, %403 : vector<8x32xf32>
    %405 = vector.broadcast %230 : vector<1x32xf32> to vector<8x32xf32>
    %406 = arith.addf %404, %405 : vector<8x32xf32>
    %c0_99 = arith.constant 0 : index
    %c0_100 = arith.constant 0 : index
    %c0_101 = arith.constant 0 : index
    %407 = vector.load %arg6[%c0_99, %c0_100, %c0_101] : memref<1x8x32xf32, #tpu.memory_space<vmem>>, vector<1x8x32xf32>
    %408 = vector.shape_cast %407 : vector<1x8x32xf32> to vector<8x32xf32>
    %409 = vector.shape_cast %406 : vector<8x32xf32> to vector<1x8x32xf32>
    tpu.vector_store %arg6[%c0_99, %c0_100, %c0_101], %409 {strides = array<i32>} : memref<1x8x32xf32, #tpu.memory_space<vmem>>, vector<1x8x32xf32>,
    return
  }
  func.func @transform_0(%arg0: i32) -> (i32, i32, i32) {
    %c0_i32 = arith.constant 0 : i32
    %c0_i32_0 = arith.constant 0 : i32
    %c0_i32_1 = arith.constant 0 : i32
    return %arg0, %c0_i32, %c0_i32_0 : i32, i32, i32
  }
  func.func @transform_1(%arg0: i32) -> (i32, i32, i32) {
    %c0_i32 = arith.constant 0 : i32
    %c0_i32_0 = arith.constant 0 : i32
    %c0_i32_1 = arith.constant 0 : i32
    return %arg0, %c0_i32, %c0_i32_0 : i32, i32, i32
  }
  func.func @transform_2(%arg0: i32) -> (i32, i32, i32) {
    %c0_i32 = arith.constant 0 : i32
    %c0_i32_0 = arith.constant 0 : i32
    %c0_i32_1 = arith.constant 0 : i32
    %c0_i32_2 = arith.constant 0 : i32
    return %c0_i32, %c0_i32_0, %c0_i32_1 : i32, i32, i32
  }
  func.func @transform_3(%arg0: i32) -> (i32, i32, i32) {
    %c0_i32 = arith.constant 0 : i32
    %c0_i32_0 = arith.constant 0 : i32
    %c0_i32_1 = arith.constant 0 : i32
    %c0_i32_2 = arith.constant 0 : i32
    return %c0_i32, %c0_i32_0, %c0_i32_1 : i32, i32, i32
  }
  func.func @transform_4(%arg0: i32) -> (i32, i32, i32) {
    %c0_i32 = arith.constant 0 : i32
    %c0_i32_0 = arith.constant 0 : i32
    %c0_i32_1 = arith.constant 0 : i32
    %c0_i32_2 = arith.constant 0 : i32
    return %c0_i32, %c0_i32_0, %c0_i32_1 : i32, i32, i32
  }
  func.func @transform_5(%arg0: i32) -> (i32, i32, i32) {
    %c0_i32 = arith.constant 0 : i32
    %c0_i32_0 = arith.constant 0 : i32
    %c0_i32_1 = arith.constant 0 : i32
    return %arg0, %c0_i32, %c0_i32_0 : i32, i32, i32
  }
}

</mosaic_0001>

<bundles_post_ra>
// kernel: transformer_decoder.1
= control target key start
LH: loop header
LB: loop body
LE: loop exit
PB: predicated region body
PF: predicated region fallthrough
CT: control target
= control target key end

     0   :  { %10 = vsyncpa [#allocation3], 0  ;;  %s2216_s0 = inlined_call_operand.vmem [shape: f32[2,8,32], index: 0, kind: input, shape index: {}]   ;;  %s2217_s1 = inlined_call_operand.vmem [shape: f32[2,12,32], index: 1, kind: input, shape index: {}]   ;;  %s2218_s2 = inlined_call_operand.vmem [shape: bf16[2,32,320], index: 2, kind: input, shape index: {}]   ;;  %s2219_s3 = inlined_call_operand.vmem [shape: bf16[2,64,32], index: 3, kind: input, shape index: {}]   ;;  %s2220_s4 = inlined_call_operand.vmem [shape: f32[2,13,96], index: 4, kind: input, shape index: {}]   ;;  %s2221_s5 = inlined_call_operand.hbm [shape: f32[2,8,32], index: 5, kind: output, shape index: {}]  }
   0x1   :  { %12 = vsyncpa [#allocation3 + $0x1], 0  ;;  %s1783_s18 = smov 0   ;;  %s1785_s19 = smov 0  }
   0x2   :  { %s1787_s20 = smov 0   ;;  %s1789_s21 = smov 0  }
   0x3 LB: > { %s1804_s22 = sadd.s32 4294967295, %s1743_s21   ;;  %s1427_s23 = sadd.s32 4294967294, %s1743_s21   ;;  %s1743_s21 = sphi %s1789_s21, %s2227_s21   ;;  %s1739_s20 = sphi %s1787_s20, %s2226_s20   ;;  %s1735_s19 = sphi %s1785_s19, %s2225_s19   ;;  %s1731_s18 = sphi %s1783_s18, %s2224_s18  }
   0x4   : > { %s1808_s24 = sadd.s32 1, %s1743_s21   ;;  %s140_s25 = sadd.s32 1, %s1739_s20 }
   0x5   : > { %s137_s26 = ssub.s32 %s1743_s21, %s1808_s24  ;;  %p150_p0 = scmp.ne.s32.totalorder %s1739_s20, %s1735_s19 }
   0x6   : > { %p138_p1 = scmp.eq.s32.totalorder %s137_s26, 0  ;;  %p151_p2 = scmp.eq.s32.totalorder %s1804_s22, 1 }
   0x7   : > { %p156_p3 = scmp.ne.s32.totalorder %s1735_s19, %s1731_s18  ;;  %p157_p4 = scmp.eq.s32.totalorder %s1427_s23, 1 }
   0x8   : > { %s1819_s27 = scalar_select %p138_p1, %s1739_s20, %s140_s25  }
   0x9   : > { %p1821_p5 = por %p151_p2, %p150_p0  ;;  %p1825_p6 = por %p157_p4, %p156_p3 }
   0xa   : > { %p1430_p7 = scmp.ge.s32.totalorder %s1743_s21, 1  ;;  %p199_p8 = scmp.lt.s32.totalorder %s1743_s21, 3 }
   0xc   : > { %p200_p9 = pnand %p1430_p7, %p199_p8 }
   0xd   : > { %p231_p10 = scmp.lt.s32.totalorder (!%p200_p9), %s1804_s22, 1  ;;  %s1745_s26 = smov (!%p200_p9), 80  }
   0xe   : > { %203 = sbr.rel (%p200_p9) target bundleno = 5923 (0x1723), region = 40  ;;  %s1746_s30 = smov (!%p200_p9), 96  }
   0xf   : > { %s1747_s6 = smov (!%p200_p9), 112   ;;  %s1748_s7 = smov (!%p200_p9), 48  }
  0x10   : > { %s1751_s10 = smov (!%p200_p9), 16  }
  0x13   : > { %v1450_v0 = vld [vmem:[%s2218_s2 + $0x18] sm:$0xf]  ;;  %v1572_v1 = vld [vmem:[%s2218_s2 + $0x20] sm:$0xf0]  ;;  %v1446_v2 = vld [vmem:[%s2218_s2] sm:$0xf] }
  0x14   : > { %v1840_v3 = vor.u32 %v1572_v1, %v1450_v0  ;;  %v1569_v4 = vld [vmem:[%s2218_s2 + $0x8] sm:$0xf0]  ;;  %s1850_s13 = scalar_select %p231_p10, %s1804_s22, 1  ;;  %vm280_vm0 = vcmask 261120   ;;  %v1865_v8 = vld [vmem:[%s2220_s4] sm:$0xff]  ;;  %vm328_vm1 = vcmask 130048  }
  0x15   : > { %v1847_v5 = vor.u32 %v1569_v4, %v1446_v2  ;;  %v299_v9 = vperm.slane %v1865_v8, 0  ;;  %vm348_vm2 = vcmask 64512   ;;  %v1571_v22 = vld [vmem:[%s2218_s2 + $0x1c] sm:$0xf]  ;;  %v1439_v23 = vld [vmem:[%s2218_s2 + $0x24] sm:$0xf0] }
  0x16   : > { %317 = vmatpush.bf16.msra.mxu1 %v1840_v3  ;;  %s1432_s14 = sshll.u32 %s1850_s13, 3  ;;  %v1881_v24 = vor.u32 %v1571_v22, %v1439_v23  ;;  %v1568_v27 = vld [vmem:[%s2218_s2 + $0x4] sm:$0xf]  ;;  %v1435_v28 = vld [vmem:[%s2218_s2 + $0xc] sm:$0xf0]  ;;  %vm366_vm3 = vcmask 1043456  }
  0x17   : > { %s234_s17 = scalar_lea.vmem %s2216_s0, %s1432_s14  ;;  %v1891_v29 = vor.u32 %v1568_v27, %v1435_v28  ;;  %s1567_s23 = sshll.u32 %s1850_s13, 4  ;;  %v263_v57 = vperm.slane %v1865_v8, 3  ;;  %v1752_v22 = vmov 32.0   ;;  %vm545_vm8 = vcmask 97280  }
  0x18   : > { %v1857_v6 = vld [vmem:[%s234_s17] sm:$0xff]  ;;  %s1749_s17 = smov 64   ;;  %s239_s9 = scalar_lea.vmem %s2217_s1, %s1567_s23  ;;  %vm564_vm9 = vcmask 1045504   ;;  %vm753_vm13 = vcmask 523264  }
  0x19   : > { %v298_v7 = vpack.c.bf16 %v1857_v6, %v1857_v6  ;;  %v242_v48 = vld [vmem:[%s239_s9] sm:$0xff]  ;;  %v243_v49 = vld [vmem:[%s239_s9 + $0x8] sm:$0xf]  ;;  %s1750_s13 = smov 32   ;;  %s1701_s9 = scalar_lea.hbm %s2221_s5, 16 }
  0x1a   : > { %318 = vmatpush.bf16.msra.mxu1 %v1847_v5  ;;  %v1909_v50 = vpack.c.bf16 %v243_v49, %v242_v48 }
  0x1d   : > { %1452 = vmatmul.msk.bf16.vlgmr.msra.gmra.mxu1 %vm280_vm0, %v298_v7 }
  0x9a   : > { %v320_v10 = vpop.f32.mrf.mxu1 }
  0x9b   : > { %v321_v11 = vadd.f32 %v320_v10, %v299_v9 }
  0x9d   : > { %v324_v12 = vpack.c.bf16 %v321_v11, %v321_v11 }
  0x9f   : > { %385 = vrot.lane.b32.xlu2 %v324_v12, %s1745_s26  ;;  %326 = vrot.lane.b32.xlu0 %v324_v12, %s1746_s30 }
  0xa2   : > { %v322_v13 = vpop.f32.mrf.mxu1 }
  0xa7   : > { %383 = vrot.lane.b32.xlu2 %v324_v12, %s1747_s6 }
  0xf9   : > { %v386_v32 = vpop.permute.xlu2 %385 }
  0xfa   : > { %v391_v36 = vsel %vm328_vm1, %v386_v32, 0 }
 0x101   : > { %v384_v42 = vpop.permute.xlu2 %383 }
 0x111   : > { %v327_v14 = vpop.permute.xlu0 %326 }
 0x112   : > { %v333_v15 = vsel %vm328_vm1, %v327_v14, 0 }
 0x113   : > { %342 = vmatpush.bf16.xpose.msra.mxu2 %v333_v15 }
 0x11a   : > { %1453 = vmatmul.msk.bf16.vlgmr.msra.gmra.mxu2 %vm328_vm1, %v324_v12 }
 0x11b   : > { %517 = vmatpush.bf16.msrb.mxu2 %v1881_v24 }
 0x11f   : > { %518 = vmatpush.bf16.msrb.mxu2 %v1891_v29 }
 0x19d   : > { %v344_v16 = vpop.f32.mrf.mxu2 }
 0x19e   : > { %v349_v17 = vsel %vm348_vm2, %v344_v16, -inf }
 0x19f   : > { %350 = vmax.xlane.f32.xlu0 %v349_v17 }
 0x1a5   : > { %v346_v18 = vpop.f32.mrf.mxu2 }
 0x1b3   : > { %418 = vrot.lane.b32.xlu0 %v324_v12, %s1748_s7 }
 0x212   : > { %v351_v19 = vpop.xlane.xlu0 %350 }
 0x213   : > { %v352_v20 = vsub.f32 %v344_v16, %v351_v19 }
 0x215   : > { %v353_v21 = vmul.f32 1.442695, %v352_v20 }
 0x217   : > { %1635 = vpow2.f32 %v353_v21 }
 0x21d   : > { %v1636_v25 = vpop.eup %1635 }
 0x21e   : > { %v355_v26 = vsel %vm348_vm2, %v1636_v25, 0.0 }
 0x21f   : > { %356 = vadd.xlane.f32.xlu1 %v355_v26 }
 0x225   : > { %v419_v39 = vpop.permute.xlu0 %418 }
 0x226   : > { %v424_v41 = vsel %vm366_vm3, %v419_v39, 0 }
 0x238   : > { %361 = vrot.lane.b32.xlu1 %v324_v12, %s1749_s17 }
 0x240   : > { %276 = vrot.lane.b32.xlu1 %v1881_v24, %s1746_s30 }
 0x248   : > { %274 = vrot.lane.b32.xlu1 %v1891_v29, %s1746_s30 }
 0x292   : > { %v357_v30 = vpop.xlane.xlu1 %356 }
 0x293   : > { %1637 = vrcp.f32 %v357_v30 }
 0x299   : > { %v1638_v31 = vpop.eup %1637 }
 0x29a   : > { %v359_v33 = vmul.f32 %v1638_v31, %v1636_v25 }
 0x29c   : > { %v360_v37 = vpack.c.bf16 %v359_v33, %v359_v33 }
 0x2aa   : > { %v362_v34 = vpop.permute.xlu1 %361 }
 0x2ab   : > { %v368_v35 = vsel %vm366_vm3, %v362_v34, 0 }
 0x2ac   : > { %377 = vmatpush.bf16.msra.mxu3 %v368_v35 }
 0x2af   : > { %1454 = vmatmul.msk.bf16.vlgmr.msra.gmra.mxu3 %vm348_vm2, %v360_v37 }
 0x2b0   : > { %400 = vmatpush.bf16.xpose.msrb.mxu3 %v391_v36 }
 0x2b2   : > { %v277_v38 = vpop.permute.xlu1 %276 }
 0x2b3   : > { %290 = vmatpush.bf16.msra.mxu0 %v277_v38 }
 0x2ba   : > { %v275_v40 = vpop.permute.xlu1 %274 }
 0x2bb   : > { %291 = vmatpush.bf16.msra.mxu0 %v275_v40 }
 0x2be   : > { %1443 = vmatmul.msk.bf16.vlgmr.msra.gmra.mxu0 %vm280_vm0, %v1909_v50 }
 0x2bf   : > { %433 = vmatpush.bf16.msrb.mxu0 %v424_v41  ;;  %1455 = vmatmul.msk.bf16.vlgmr.msrb.gmra.mxu3 %vm328_vm1, %v384_v42 }
 0x332   : > { %v379_v43 = vpop.f32.mrf.mxu3 }
 0x33a   : > { %v381_v44 = vpop.f32.mrf.mxu3 }
 0x33b   : > { %v293_v56 = vpop.f32.mrf.mxu0  ;;  %v500_v44 = vperm.slane %v1865_v8, 5 }
 0x33c   : > { %v294_v58 = vadd.f32 %v293_v56, %v263_v57 }
 0x342   : > { %v402_v45 = vpop.f32.mrf.mxu3 }
 0x343   : > { %v406_v46 = vsel %vm348_vm2, %v402_v45, -inf  ;;  %v295_v59 = vpop.f32.mrf.mxu0 }
 0x344   : > { %407 = vmax.xlane.f32.xlu2 %v406_v46  ;;  %v296_v60 = vadd.f32 %v295_v59, %v263_v57 }
 0x346   : > { %v1915_v61 = vpack.c.bf16 %v296_v60, %v294_v58 }
 0x348   : > { %v530_v62 = vsel %vm328_vm1, %v1915_v61, 0 }
 0x349   : > { %539 = vmatpush.bf16.xpose.msra.mxu3 %v530_v62 }
 0x34a   : > { %v404_v47 = vpop.f32.mrf.mxu3 }
 0x34b   : > { %v502_v47 = vperm.slane %v1865_v8, 6 }
 0x35c   : > { %448 = vrot.lane.b32.xlu2 %v1840_v3, %s1750_s13  ;;  %v445_v3 = vperm.slane %v1865_v8, 1 }
 0x3b7   : > { %v408_v51 = vpop.xlane.xlu2 %407 }
 0x3b8   : > { %v409_v52 = vsub.f32 %v402_v45, %v408_v51 }
 0x3ba   : > { %v410_v53 = vmul.f32 1.442695, %v409_v52  ;;  %v505_v52 = vperm.slane %v1865_v8, 2 }
 0x3bc   : > { %1639 = vpow2.f32 %v410_v53 }
 0x3bf   : > { %v449_v4 = vpop.permute.xlu2 %448 }
 0x3c0   : > { %461 = vmatpush.bf16.msrb.mxu1 %v449_v4 }
 0x3c2   : > { %v1640_v54 = vpop.eup %1639 }
 0x3c3   : > { %v412_v55 = vsel %vm348_vm2, %v1640_v54, 0.0 }
 0x3c4   : > { %413 = vadd.xlane.f32.xlu1 %v412_v55 }
 0x3dd   : > { %584 = vrot.lane.b32.xlu1 %v1915_v61, %s1747_s6 }
 0x437   : > { %v414_v63 = vpop.xlane.xlu1 %413 }
 0x438   : > { %1641 = vrcp.f32 %v414_v63 }
 0x439   : > { %1643 = vrcp.f32 %v1752_v22 }
 0x43e   : > { %v1642_v0 = vpop.eup %1641 }
 0x43f   : > { %v416_v1 = vmul.f32 %v1642_v0, %v1640_v54  ;;  %v1644_v23 = vpop.eup %1643 }
 0x440   : > { %v473_v25 = vmul.f32 32.0, %v1644_v23  ;;  %vm477_vm4 = vweird.f32 %v1644_v23 }
 0x441   : > { %v417_v2 = vpack.c.bf16 %v416_v1, %v416_v1 }
 0x442   : > { %v474_v26 = vsub.f32 1.0, %v473_v25 }
 0x443   : > { %1456 = vmatmul.msk.bf16.vlgmr.msrb.gmra.mxu0 %vm348_vm2, %v417_v2 }
 0x444   : > { %v475_v27 = vmul.f32 %v1644_v23, %v474_v26 }
 0x446   : > { %v476_v28 = vadd.f32 %v1644_v23, %v475_v27 }
 0x448   : > { %v1934_v30 = vsel %vm477_vm4, %v1644_v23, %v476_v28 }
 0x44f   : > { %v585_v11 = vpop.permute.xlu1 %584 }
 0x450   : > { %v590_v14 = vsel %vm328_vm1, %v585_v11, 0 }
 0x4c0   : > { %v435_v7 = vpop.f32.mrf.mxu0 }
 0x4c1   : > { %440 = vrot.lane.b32.xlu0 %v435_v7, %s1751_s10 }
 0x4c8   : > { %v437_v9 = vpop.f32.mrf.mxu0 }
 0x4c9   : > { %446 = vrot.lane.b32.xlu0 %v1847_v5, %s1750_s13 }
 0x533   : > { %v441_v10 = vpop.permute.xlu0 %440 }
 0x534   : > { %v443_v12 = vsel %vm328_vm1, %v379_v43, %v441_v10 }
 0x535   : > { %v444_v15 = vpack.c.bf16 %v443_v12, %v443_v12 }
 0x53b   : > { %v447_v13 = vpop.permute.xlu0 %446 }
 0x53c   : > { %462 = vmatpush.bf16.msrb.mxu1 %v447_v13 }
 0x53f   : > { %1457 = vmatmul.msk.bf16.vlgmr.msrb.gmra.mxu1 %vm280_vm0, %v444_v15 }
 0x540   : > { %599 = vmatpush.bf16.xpose.msra.mxu1 %v590_v14 }
 0x5bc   : > { %v464_v16 = vpop.f32.mrf.mxu1 }
 0x5bd   : > { %v465_v17 = vadd.f32 %v464_v16, %v445_v3 }
 0x5bf   : > { %v468_v18 = vadd.f32 %v465_v17, %v1857_v6 }
 0x5c1   : > { %v469_v5 = vsel %vm280_vm0, %v468_v18, 0.0  ;;  %v480_v19 = vmul.f32 %v468_v18, %v468_v18 }
 0x5c2   : > { %470 = vadd.xlane.f32.xlu2 %v469_v5 }
 0x5c3   : > { %v481_v20 = vsel %vm280_vm0, %v480_v19, 0.0 }
 0x5c4   : > { %v466_v21 = vpop.f32.mrf.mxu1  ;;  %482 = vadd.xlane.f32.xlu0 %v481_v20 }
 0x635   : > { %v471_v31 = vpop.xlane.xlu2 %470 }
 0x636   : > { %v479_v6 = vmul.f32 %v1934_v30, %v471_v31 }
 0x637   : > { %v483_v32 = vpop.xlane.xlu0 %482 }
 0x638   : > { %v485_v33 = vmul.f32 %v479_v6, %v479_v6  ;;  %v484_v34 = vmul.f32 %v483_v32, %v1934_v30  ;;  %v487_v43 = vsub.f32 %v468_v18, %v479_v6 }
 0x63a   : > { %v486_v35 = vsub.f32 %v484_v34, %v485_v33  ;;  %v644_v33 = vperm.slane %v1865_v8, 4 }
 0x63c   : > { %v488_v36 = vadd.f32 1e-05, %v486_v35 }
 0x63e   : > { %1645 = vrsqrt.f32 %v488_v36  ;;  %vm495_vm6 = vweird.f32 %v488_v36 }
 0x644   : > { %v1646_v37 = vpop.eup %1645 }
 0x645   : > { %v490_v38 = vmul.f32 %v1646_v37, %v488_v36  ;;  %vm496_vm5 = vweird.f32 %v1646_v37 }
 0x646   : > { %vm497_vm7 = vmor %vm495_vm6, %vm496_vm5 }
 0x647   : > { %v491_v39 = vmul.f32 %v1646_v37, %v490_v38 }
 0x649   : > { %v492_v40 = vmul.f32 0.5, %v491_v39 }
 0x64b   : > { %v493_v41 = vsub.f32 1.5, %v492_v40 }
 0x64d   : > { %v494_v42 = vmul.f32 %v1646_v37, %v493_v41  ;;  %v1470_v41 = vld [vmem:[%s2218_s2 + $0x20] sm:$0xf] }
 0x64f   : > { %v498_v45 = vsel %vm497_vm7, %v1646_v37, %v494_v42  ;;  %v1573_v42 = vld [vmem:[%s2218_s2 + $0x28] sm:$0xf0] }
 0x650   : > { %v499_v46 = vmul.f32 %v498_v45, %v487_v43  ;;  %v1471_v43 = vor.u32 %v1573_v42, %v1470_v41  ;;  %v1570_v45 = vld [vmem:[%s2218_s2 + $0x10] sm:$0xf0]  ;;  %v1508_v42 = vld [vmem:[%s2218_s2 + $0x3c] sm:$0xf0] }
 0x651   : > { %v1578_v41 = vld [vmem:[%s2218_s2 + $0x34] sm:$0xf] }
 0x652   : > { %v501_v48 = vmul.f32 %v500_v44, %v499_v46  ;;  %v1466_v44 = vld [vmem:[%s2218_s2 + $0x8] sm:$0xf] }
 0x653   : > { %v1467_v46 = vor.u32 %v1570_v45, %v1466_v44 }
 0x654   : > { %v1940_v49 = vadd.f32 %v502_v47, %v501_v48 }
 0x656   : > { %v504_v51 = vpack.c.bf16 %v1940_v49, %v1940_v49 }
 0x658   : > { %1458 = vmatmul.msk.bf16.vlgmr.msrb.gmra.mxu2 %vm280_vm0, %v504_v51 }
 0x6db   : > { %v520_v53 = vpop.f32.mrf.mxu2 }
 0x6dc   : > { %v521_v54 = vadd.f32 %v520_v53, %v505_v52  ;;  %v1577_v53 = vld [vmem:[%s2219_s3 + $0x18] sm:$0xff] }
 0x6dd   : > { %761 = vmatpush.bf16.msrb.mxu1 %v1577_v53 }
 0x6de   : > { %v524_v55 = vpack.c.bf16 %v521_v54, %v521_v54 }
 0x6e0   : > { %582 = vrot.lane.b32.xlu1 %v524_v55, %s1747_s6  ;;  %1459 = vmatmul.msk.bf16.vlgmr.msra.gmra.mxu3 %vm328_vm1, %v524_v55  ;;  %v1576_v55 = vld [vmem:[%s2219_s3 + $0x10] sm:$0xff] }
 0x6e1   : > { %762 = vmatpush.bf16.msrb.mxu1 %v1576_v55 }
 0x6e3   : > { %v522_v56 = vpop.f32.mrf.mxu2 }
 0x752   : > { %v583_v57 = vpop.permute.xlu1 %582 }
 0x753   : > { %1461 = vmatmul.msk.bf16.vlgmr.msra.gmra.mxu1 %vm328_vm1, %v583_v57 }
 0x763   : > { %v541_v58 = vpop.f32.mrf.mxu3 }
 0x764   : > { %v546_v59 = vsel %vm545_vm8, %v541_v58, -inf }
 0x765   : > { %547 = vmax.xlane.f32.xlu1 %v546_v59 }
 0x76b   : > { %v543_v60 = vpop.f32.mrf.mxu3 }
 0x7d0   : > { %v601_v62 = vpop.f32.mrf.mxu1 }
 0x7d1   : > { %v605_v63 = vsel %vm545_vm8, %v601_v62, -inf }
 0x7d2   : > { %606 = vmax.xlane.f32.xlu2 %v605_v63 }
 0x7d8   : > { %v603_v0 = vpop.f32.mrf.mxu1  ;;  %v548_v1 = vpop.xlane.xlu1 %547 }
 0x7d9   : > { %v549_v7 = vsub.f32 %v541_v58, %v548_v1  ;;  %v1995_v0 = vld [vmem:[%s2220_s4 + $0x8] sm:$0x1f] }
 0x7da   : > { %v797_v55 = vperm.slane %v1995_v0, 4 }
 0x7db   : > { %v550_v10 = vmul.f32 1.442695, %v549_v7 }
 0x7ea   : > { %617 = vrot.lane.b32.xlu2 %v1915_v61, %s1745_s26 }
 0x7f2   : > { %647 = vrot.lane.b32.xlu2 %v1881_v24, %s1750_s13 }
 0x845   : > { %v607_v2 = vpop.xlane.xlu2 %606 }
 0x846   : > { %v608_v4 = vsub.f32 %v601_v62, %v607_v2  ;;  %v692_v2 = vperm.slane %v1865_v8, 7  ;;  %v697_v8 = vperm.slane %v1995_v0, 1 }
 0x848   : > { %v609_v9 = vmul.f32 1.442695, %v608_v4 }
 0x84a   : > { %1647 = vpow2.f32 %v609_v9  ;;  %v694_v9 = vperm.slane %v1995_v0, 0 }
 0x84b   : > { %1649 = vpow2.f32 %v550_v10 }
 0x84d   : > { %v618_v11 = vpop.permute.xlu2 %617 }
 0x84e   : > { %v623_v12 = vsel %vm564_vm9, %v618_v11, 0 }
 0x84f   : > { %632 = vmatpush.bf16.msra.mxu2 %v623_v12 }
 0x850   : > { %v1648_v13 = vpop.eup %1647 }
 0x851   : > { %v611_v14 = vsel %vm545_vm8, %v1648_v13, 0.0  ;;  %v1650_v15 = vpop.eup %1649 }
 0x852   : > { %612 = vadd.xlane.f32.xlu0 %v611_v14  ;;  %v552_v24 = vsel %vm545_vm8, %v1650_v15, 0.0  ;;  %v1574_v14 = vld [vmem:[%s2219_s3] sm:$0xff] }
 0x85a   : > { %553 = vadd.xlane.f32.xlu0 %v552_v24 }
 0x86e   : > { %559 = vrot.lane.b32.xlu0 %v1915_v61, %s1746_s30  ;;  %v648_v61 = vpop.permute.xlu2 %647 }
 0x86f   : > { %660 = vmatpush.bf16.msrb.mxu3 %v648_v61 }
 0x876   : > { %645 = vrot.lane.b32.xlu0 %v1891_v29, %s1750_s13 }
 0x8c5   : > { %v613_v3 = vpop.xlane.xlu0 %612 }
 0x8c6   : > { %1651 = vrcp.f32 %v613_v3 }
 0x8cc   : > { %v1652_v16 = vpop.eup %1651 }
 0x8cd   : > { %v615_v17 = vmul.f32 %v1652_v16, %v1648_v13  ;;  %v554_v5 = vpop.xlane.xlu0 %553  ;;  %v1575_v13 = vld [vmem:[%s2219_s3 + $0x8] sm:$0xff] }
 0x8ce   : > { %1653 = vrcp.f32 %v554_v5  ;;  %763 = vmatpush.bf16.msrb.mxu1 %v1575_v13 }
 0x8cf   : > { %v616_v18 = vpack.c.bf16 %v615_v17, %v615_v17 }
 0x8d1   : > { %1462 = vmatmul.msk.bf16.vlgmr.msra.gmra.mxu2 %vm545_vm8, %v616_v18  ;;  %v728_v18 = vperm.slane %v1995_v0, 2 }
 0x8d2   : > { %764 = vmatpush.bf16.msrb.mxu1 %v1574_v14 }
 0x8d4   : > { %v1654_v19 = vpop.eup %1653 }
 0x8d5   : > { %v556_v20 = vmul.f32 %v1654_v19, %v1650_v15 }
 0x8d7   : > { %v557_v23 = vpack.c.bf16 %v556_v20, %v556_v20 }
 0x8e0   : > { %v560_v21 = vpop.permute.xlu0 %559 }
 0x8e1   : > { %v566_v22 = vsel %vm564_vm9, %v560_v21, 0 }
 0x8e2   : > { %575 = vmatpush.bf16.msra.mxu0 %v566_v22 }
 0x8e5   : > { %1460 = vmatmul.msk.bf16.vlgmr.msra.gmra.mxu0 %vm545_vm8, %v557_v23 }
 0x8e6   : > { %719 = vmatpush.bf16.msrb.mxu0 %v1471_v43  ;;  %v2047_v43 = vor.u32 %v1578_v41, %v1508_v42 }
 0x8e8   : > { %v646_v28 = vpop.permute.xlu0 %645 }
 0x8e9   : > { %661 = vmatpush.bf16.msrb.mxu3 %v646_v28  ;;  %v1579_v28 = vld [vmem:[%s2218_s2 + $0x38] sm:$0xf0] }
 0x8ea   : > { %720 = vmatpush.bf16.msrb.mxu0 %v1467_v46 }
 0x954   : > { %v634_v29 = vpop.f32.mrf.mxu2 }
 0x955   : > { %639 = vrot.lane.b32.xlu2 %v634_v29, %s1751_s10  ;;  %v1523_v29 = vld [vmem:[%s2218_s2 + $0x48] sm:$0xf] }
 0x95c   : > { %v636_v25 = vpop.f32.mrf.mxu2 }
 0x95d   : > { %v1582_v25 = vld [vmem:[%s2218_s2 + $0x50] sm:$0xf0] }
 0x962   : > { %v577_v26 = vpop.f32.mrf.mxu0 }
 0x96a   : > { %v579_v27 = vpop.f32.mrf.mxu0 }
 0x96b   : > { %v1519_v27 = vld [vmem:[%s2218_s2 + $0x30] sm:$0xf] }
 0x9af   : > { %v640_v31 = vpop.permute.xlu2 %639 }
 0x9b0   : > { %v642_v6 = vsel %vm328_vm1, %v577_v26, %v640_v31  ;;  %v2017_v26 = vor.u32 %v1582_v25, %v1523_v29  ;;  %v2026_v31 = vor.u32 %v1579_v28, %v1519_v27 }
 0x9b1   : > { %v643_v32 = vpack.c.bf16 %v642_v6, %v642_v6 }
 0x9b2   : > { %870 = vmatpush.bf16.msra.mxu3 %v2017_v26 }
 0x9b3   : > { %1463 = vmatmul.msk.bf16.vlgmr.msrb.gmra.mxu3 %vm280_vm0, %v643_v32 }
 0x9b6   : > { %871 = vmatpush.bf16.msra.mxu3 %v2026_v31 }
 0xa36   : > { %v663_v34 = vpop.f32.mrf.mxu3 }
 0xa37   : > { %v664_v35 = vadd.f32 %v663_v34, %v644_v33 }
 0xa39   : > { %v667_v36 = vadd.f32 %v664_v35, %v1940_v49 }
 0xa3b   : > { %v668_v37 = vsel %vm280_vm0, %v667_v36, 0.0  ;;  %v672_v38 = vmul.f32 %v667_v36, %v667_v36 }
 0xa3c   : > { %669 = vadd.xlane.f32.xlu1 %v668_v37  ;;  %v1512_v37 = vld [vmem:[%s2218_s2 + $0x54] sm:$0xf0] }
 0xa3d   : > { %v673_v39 = vsel %vm280_vm0, %v672_v38, 0.0 }
 0xa3e   : > { %v665_v40 = vpop.f32.mrf.mxu3  ;;  %674 = vadd.xlane.f32.xlu2 %v673_v39 }
 0xaaf   : > { %v670_v47 = vpop.xlane.xlu1 %669 }
 0xab0   : > { %v671_v48 = vmul.f32 %v670_v47, %v1934_v30 }
 0xab1   : > { %v675_v49 = vpop.xlane.xlu2 %674 }
 0xab2   : > { %v677_v51 = vmul.f32 %v671_v48, %v671_v48  ;;  %v676_v52 = vmul.f32 %v675_v49, %v1934_v30  ;;  %v679_v1 = vsub.f32 %v667_v36, %v671_v48  ;;  %v1581_v36 = vld [vmem:[%s2218_s2 + $0x4c] sm:$0xf] }
 0xab3   : > { %v2037_v38 = vor.u32 %v1581_v36, %v1512_v37 }
 0xab4   : > { %v678_v54 = vsub.f32 %v676_v52, %v677_v51  ;;  %v795_v52 = vperm.slane %v1995_v0, 3 }
 0xab6   : > { %v680_v56 = vadd.f32 1e-05, %v678_v54 }
 0xab8   : > { %1655 = vrsqrt.f32 %v680_v56  ;;  %vm687_vm11 = vweird.f32 %v680_v56 }
 0xabe   : > { %v1656_v57 = vpop.eup %1655 }
 0xabf   : > { %v682_v58 = vmul.f32 %v1656_v57, %v680_v56  ;;  %vm688_vm10 = vweird.f32 %v1656_v57 }
 0xac0   : > { %vm689_vm12 = vmor %vm687_vm11, %vm688_vm10 }
 0xac1   : > { %v683_v59 = vmul.f32 %v1656_v57, %v682_v58 }
 0xac3   : > { %v684_v60 = vmul.f32 0.5, %v683_v59 }
 0xac5   : > { %v685_v62 = vsub.f32 1.5, %v684_v60 }
 0xac7   : > { %v686_v63 = vmul.f32 %v1656_v57, %v685_v62  ;;  %v2063_v62 = vld [vmem:[%s2220_s4 + $0x10] sm:$0xff] }
 0xac8   : > { %v820_v13 = vperm.slane %v2063_v62, 3 }
 0xac9   : > { %v690_v4 = vsel %vm689_vm12, %v1656_v57, %v686_v63  ;;  %v852_v63 = vperm.slane %v2063_v62, 0 }
 0xaca   : > { %v691_v7 = vmul.f32 %v690_v4, %v679_v1 }
 0xacc   : > { %v693_v10 = vmul.f32 %v692_v2, %v691_v7 }
 0xace   : > { %v695_v11 = vadd.f32 %v694_v9, %v693_v10 }
 0xad0   : > { %v696_v12 = vpack.c.bf16 %v695_v11, %v695_v11 }
 0xad2   : > { %1472 = vmatmul.msk.bf16.vlgmr.msrb.gmra.mxu0 %vm280_vm0, %v696_v12 }
 0xb4f   : > { %v722_v15 = vpop.f32.mrf.mxu0 }
 0xb50   : > { %v723_v24 = vadd.f32 %v722_v15, %v697_v8 }
 0xb52   : > { %v726_v3 = vmax.f32 %v723_v24, 0.0 }
 0xb54   : > { %v727_v16 = vpack.c.bf16 %v726_v3, %v726_v3 }
 0xb56   : > { %1489 = vmatmul.msk.bf16.vlgmr.msrb.gmra.mxu1 %vm753_vm13, %v727_v16 }
 0xb57   : > { %v724_v17 = vpop.f32.mrf.mxu0 }
 0xbd3   : > { %v766_v5 = vpop.f32.mrf.mxu1 }
 0xbd4   : > { %v767_v19 = vadd.f32 %v766_v5, %v728_v18 }
 0xbd6   : > { %v770_v20 = vadd.f32 %v767_v19, %v695_v11 }
 0xbd8   : > { %v771_v21 = vsel %vm280_vm0, %v770_v20, 0.0  ;;  %v775_v22 = vmul.f32 %v770_v20, %v770_v20 }
 0xbd9   : > { %772 = vadd.xlane.f32.xlu0 %v771_v21 }
 0xbda   : > { %v776_v23 = vsel %vm280_vm0, %v775_v22, 0.0 }
 0xbdb   : > { %v768_v61 = vpop.f32.mrf.mxu1  ;;  %777 = vadd.xlane.f32.xlu1 %v776_v23 }
 0xbf4   : > { %833 = vrot.lane.b32.xlu1 %v2037_v38, %s1746_s30 }
 0xbfc   : > { %831 = vrot.lane.b32.xlu1 %v2047_v43, %s1746_s30 }
 0xc4c   : > { %v773_v6 = vpop.xlane.xlu0 %772 }
 0xc4d   : > { %v774_v32 = vmul.f32 %v773_v6, %v1934_v30 }
 0xc4e   : > { %v778_v33 = vpop.xlane.xlu1 %777 }
 0xc4f   : > { %v780_v34 = vmul.f32 %v774_v32, %v774_v32  ;;  %v779_v35 = vmul.f32 %v778_v33, %v1934_v30  ;;  %v782_v51 = vsub.f32 %v770_v20, %v774_v32 }
 0xc51   : > { %v781_v39 = vsub.f32 %v779_v35, %v780_v34 }
 0xc53   : > { %v783_v40 = vadd.f32 1e-05, %v781_v39 }
 0xc55   : > { %1657 = vrsqrt.f32 %v783_v40  ;;  %vm790_vm15 = vweird.f32 %v783_v40 }
 0xc5b   : > { %v1658_v44 = vpop.eup %1657 }
 0xc5c   : > { %v785_v45 = vmul.f32 %v1658_v44, %v783_v40  ;;  %vm791_vm14 = vweird.f32 %v1658_v44 }
 0xc5d   : > { %vm792_vm4 = vmor %vm790_vm15, %vm791_vm14 }
 0xc5e   : > { %v786_v46 = vmul.f32 %v1658_v44, %v785_v45 }
 0xc60   : > { %v787_v47 = vmul.f32 0.5, %v786_v46 }
 0xc62   : > { %v788_v48 = vsub.f32 1.5, %v787_v47 }
 0xc64   : > { %v789_v49 = vmul.f32 %v1658_v44, %v788_v48 }
 0xc66   : > { %v793_v53 = vsel %vm792_vm4, %v1658_v44, %v789_v49  ;;  %v834_v59 = vpop.permute.xlu1 %833 }
 0xc67   : > { %v794_v54 = vmul.f32 %v793_v53, %v782_v51  ;;  %843 = vmatpush.bf16.msrb.mxu2 %v834_v59  ;;  %v995_v59 = vperm.slane %v2063_v62, 1 }
 0xc69   : > { %v796_v56 = vmul.f32 %v795_v52, %v794_v54 }
 0xc6b   : > { %v2053_v57 = vadd.f32 %v797_v55, %v796_v56 }
 0xc6d   : > { %v851_v58 = vpack.c.bf16 %v2053_v57, %v2053_v57 }
 0xc6e   : > { %v832_v60 = vpop.permute.xlu1 %831 }
 0xc6f   : > { %1525 = vmatmul.msk.bf16.vlgmr.msra.gmra.mxu3 %vm280_vm0, %v851_v58  ;;  %844 = vmatpush.bf16.msrb.mxu2 %v832_v60 }
 0xc72   : > { %1516 = vmatmul.msk.bf16.vlgmr.msrb.gmra.mxu2 %vm280_vm0, %v1909_v50 }
 0xcf2   : > { %v873_v0 = vpop.f32.mrf.mxu3 }
 0xcf3   : > { %v874_v1 = vadd.f32 %v873_v0, %v852_v63 }
 0xcf5   : > { %v877_v2 = vpack.c.bf16 %v874_v1, %v874_v1  ;;  %v846_v12 = vpop.f32.mrf.mxu2 }
 0xcf6   : > { %v847_v14 = vadd.f32 %v846_v12, %v820_v13 }
 0xcf7   : > { %879 = vrot.lane.b32.xlu1 %v877_v2, %s1746_s30  ;;  %933 = vrot.lane.b32.xlu0 %v877_v2, %s1747_s6 }
 0xcf8   : > { %935 = vrot.lane.b32.xlu2 %v877_v2, %s1745_s26 }
 0xcfa   : > { %v875_v4 = vpop.f32.mrf.mxu3 }
 0xcfd   : > { %v848_v8 = vpop.f32.mrf.mxu2 }
 0xcfe   : > { %v849_v15 = vadd.f32 %v848_v8, %v820_v13 }
 0xd00   : > { %v2074_v24 = vpack.c.bf16 %v849_v15, %v847_v14 }
 0xd02   : > { %v1073_v3 = vsel %vm328_vm1, %v2074_v24, 0 }
 0xd52   : > { %v936_v7 = vpop.permute.xlu2 %935 }
 0xd53   : > { %v941_v50 = vsel %vm328_vm1, %v936_v7, 0 }
 0xd54   : > { %950 = vmatpush.bf16.xpose.msra.mxu2 %v941_v50 }
 0xd5c   : > { %1082 = vmatpush.bf16.xpose.msrb.mxu2 %v1073_v3 }
 0xd69   : > { %v880_v9 = vpop.permute.xlu1 %879  ;;  %v934_v10 = vpop.permute.xlu0 %933 }
 0xd6a   : > { %v885_v11 = vsel %vm328_vm1, %v880_v9, 0  ;;  %1528 = vmatmul.msk.bf16.vlgmr.msra.gmra.mxu2 %vm328_vm1, %v934_v10 }
 0xd6b   : > { %894 = vmatpush.bf16.xpose.msra.mxu0 %v885_v11 }
 0xd72   : > { %1526 = vmatmul.msk.bf16.vlgmr.msra.gmra.mxu0 %vm328_vm1, %v877_v2 }
 0xded   : > { %v952_v16 = vpop.f32.mrf.mxu2 }
 0xdee   : > { %v956_v17 = vsel %vm348_vm2, %v952_v16, -inf }
 0xdef   : > { %v896_v18 = vpop.f32.mrf.mxu0  ;;  %957 = vmax.xlane.f32.xlu1 %v956_v17 }
 0xdf0   : > { %v900_v5 = vsel %vm348_vm2, %v896_v18, -inf }
 0xdf1   : > { %901 = vmax.xlane.f32.xlu0 %v900_v5 }
 0xdf5   : > { %v954_v19 = vpop.f32.mrf.mxu2 }
 0xdf7   : > { %v898_v20 = vpop.f32.mrf.mxu0 }
 0xdf8   : > { %v1045_v20 = vperm.slane %v2063_v62, 6 }
 0xe08   : > { %968 = vrot.lane.b32.xlu1 %v877_v2, %s1748_s7 }
 0xe62   : > { %v958_v21 = vpop.xlane.xlu1 %957 }
 0xe63   : > { %v959_v22 = vsub.f32 %v952_v16, %v958_v21 }
 0xe64   : > { %v902_v23 = vpop.xlane.xlu0 %901 }
 0xe65   : > { %v960_v61 = vmul.f32 1.442695, %v959_v22  ;;  %v903_v29 = vsub.f32 %v896_v18, %v902_v23  ;;  %v1043_v18 = vperm.slane %v2063_v62, 5 }
 0xe67   : > { %1659 = vpow2.f32 %v960_v61  ;;  %v904_v25 = vmul.f32 1.442695, %v903_v29  ;;  %v1048_v61 = vperm.slane %v2063_v62, 2 }
 0xe69   : > { %1661 = vpow2.f32 %v904_v25 }
 0xe6d   : > { %v1660_v27 = vpop.eup %1659 }
 0xe6e   : > { %v962_v28 = vsel %vm348_vm2, %v1660_v27, 0.0 }
 0xe6f   : > { %v1662_v6 = vpop.eup %1661  ;;  %963 = vadd.xlane.f32.xlu2 %v962_v28 }
 0xe70   : > { %v906_v32 = vsel %vm348_vm2, %v1662_v6, 0.0 }
 0xe71   : > { %907 = vadd.xlane.f32.xlu0 %v906_v32 }
 0xe7a   : > { %v969_v33 = vpop.permute.xlu1 %968 }
 0xe7b   : > { %v974_v34 = vsel %vm366_vm3, %v969_v33, 0 }
 0xe7c   : > { %983 = vmatpush.bf16.msrb.mxu3 %v974_v34 }
 0xe85   : > { %998 = vrot.lane.b32.xlu0 %v2017_v26, %s1750_s13 }
 0xe87   : > { %912 = vrot.lane.b32.xlu2 %v877_v2, %s1749_s17  ;;  %s1564_s17 = sshll.u32 %s1804_s22, 3 }
 0xe88   : > { %s1351_s11 = scalar_lea.hbm %s2221_s5, %s1564_s17 }
 0xe89   : > { %s1355_s15 = sshll.u32 %s1351_s11, 4  ;;  %s1356_s15 = int_to_ptr.hbm [resolvable:$true] %s1355_s15 }
 0xe8a   : > { %s1695_s16 = sshra.s32 %s1356_s15, 4  ;;  %s1696_s16 = int_to_ptr.hbm [resolvable:$true] %s1695_s16 }
 0xe8b   : > { %s1697_s23 = scalar_lea.hbm %s1696_s16, 8  ;;  %p1702_p0 = scmp.lt.s32.totalorder %s1696_s16, %s2221_s5 }
 0xe8c   : > { %p1698_p11 = scmp.ne.s32.totalorder %s1696_s16, %s1697_s23  ;;  %p1703_p1 = scmp.lt.s32.totalorder %s1701_s9, %s1697_s23 }
 0xe8e   : > { %p1699_p12 = pnand %p1698_p11, %p1821_p5  ;;  %p1704_p2 = por %p1703_p1, %p1702_p0 }
 0xe90   : > { %p1700_p13 = pneg %p1699_p12 }
 0xe92   : > { %p1705_p3 = pnand %p1704_p2, %p1700_p13 }
 0xee2   : > { %v964_v35 = vpop.xlane.xlu2 %963 }
 0xee3   : > { %1663 = vrcp.f32 %v964_v35 }
 0xee4   : > { %v908_v36 = vpop.xlane.xlu0 %907 }
 0xee5   : > { %1665 = vrcp.f32 %v908_v36 }
 0xee9   : > { %v1664_v37 = vpop.eup %1663 }
 0xeea   : > { %v966_v39 = vmul.f32 %v1664_v37, %v1660_v27  ;;  %v913_v40 = vpop.permute.xlu2 %912 }
 0xeeb   : > { %v1666_v41 = vpop.eup %1665  ;;  %v918_v42 = vsel %vm366_vm3, %v913_v40, 0 }
 0xeec   : > { %v967_v44 = vpack.c.bf16 %v966_v39, %v966_v39  ;;  %v910_v45 = vmul.f32 %v1666_v41, %v1662_v6  ;;  %927 = vmatpush.bf16.msra.mxu1 %v918_v42 }
 0xeee   : > { %v911_v46 = vpack.c.bf16 %v910_v45, %v910_v45  ;;  %1529 = vmatmul.msk.bf16.vlgmr.msrb.gmra.mxu3 %vm348_vm2, %v967_v44 }
 0xef0   : > { %1060 = vmatpush.bf16.msrb.mxu1 %v2037_v38 }
 0xef1   : > { %1527 = vmatmul.msk.bf16.vlgmr.msra.gmra.mxu1 %vm348_vm2, %v911_v46 }
 0xef4   : > { %1061 = vmatpush.bf16.msrb.mxu1 %v2047_v43 }
 0xef7   : > { %v999_v26 = vpop.permute.xlu0 %998 }
 0xef8   : > { %1011 = vmatpush.bf16.msrb.mxu0 %v999_v26 }
 0xf6e   : > { %v929_v47 = vpop.f32.mrf.mxu1 }
 0xf71   : > { %v985_v48 = vpop.f32.mrf.mxu3 }
 0xf72   : > { %990 = vrot.lane.b32.xlu1 %v985_v48, %s1751_s10 }
 0xf76   : > { %v931_v49 = vpop.f32.mrf.mxu1 }
 0xf79   : > { %v987_v51 = vpop.f32.mrf.mxu3 }
 0xf7a   : > { %996 = vrot.lane.b32.xlu1 %v2026_v31, %s1750_s13 }
 0xf82   : > { %1125 = vrot.lane.b32.xlu1 %v2074_v24, %s1747_s6 }
 0xfe4   : > { %v991_v52 = vpop.permute.xlu1 %990 }
 0xfe5   : > { %v993_v53 = vsel %vm328_vm1, %v929_v47, %v991_v52 }
 0xfe6   : > { %v994_v55 = vpack.c.bf16 %v993_v53, %v993_v53 }
 0xfec   : > { %v997_v54 = vpop.permute.xlu1 %996 }
 0xfed   : > { %1012 = vmatpush.bf16.msrb.mxu0 %v997_v54 }
 0xff0   : > { %1530 = vmatmul.msk.bf16.vlgmr.msrb.gmra.mxu0 %vm280_vm0, %v994_v55 }
 0xff4   : > { %v1126_v56 = vpop.permute.xlu1 %1125 }
 0xff5   : > { %v1131_v58 = vsel %vm328_vm1, %v1126_v56, 0 }
 0xff6   : > { %1140 = vmatpush.bf16.xpose.msra.mxu0 %v1131_v58 }
0x106d   : > { %v1014_v60 = vpop.f32.mrf.mxu0 }
0x106e   : > { %v1015_v63 = vadd.f32 %v1014_v60, %v995_v59 }
0x1070   : > { %v1018_v31 = vadd.f32 %v1015_v63, %v2053_v57 }
0x1072   : > { %v1019_v0 = vsel %vm280_vm0, %v1018_v31, 0.0  ;;  %v1023_v1 = vmul.f32 %v1018_v31, %v1018_v31 }
0x1073   : > { %1020 = vadd.xlane.f32.xlu2 %v1019_v0 }
0x1074   : > { %v1024_v2 = vsel %vm280_vm0, %v1023_v1, 0.0 }
0x1075   : > { %v1016_v4 = vpop.f32.mrf.mxu0  ;;  %1025 = vadd.xlane.f32.xlu0 %v1024_v2 }
0x10e6   : > { %v1021_v7 = vpop.xlane.xlu2 %1020 }
0x10e7   : > { %v1022_v50 = vmul.f32 %v1021_v7, %v1934_v30 }
0x10e8   : > { %v1026_v9 = vpop.xlane.xlu0 %1025 }
0x10e9   : > { %v1028_v10 = vmul.f32 %v1022_v50, %v1022_v50  ;;  %v1027_v11 = vmul.f32 %v1026_v9, %v1934_v30  ;;  %v1030_v17 = vsub.f32 %v1018_v31, %v1022_v50 }
0x10eb   : > { %v1029_v12 = vsub.f32 %v1027_v11, %v1028_v10  ;;  %v1185_v10 = vperm.slane %v2063_v62, 4 }
0x10ed   : > { %v1031_v13 = vadd.f32 1e-05, %v1029_v12 }
0x10ef   : > { %1667 = vrsqrt.f32 %v1031_v13  ;;  %vm1038_vm3 = vweird.f32 %v1031_v13 }
0x10f5   : > { %v1668_v14 = vpop.eup %1667 }
0x10f6   : > { %v1033_v57 = vmul.f32 %v1668_v14, %v1031_v13  ;;  %vm1039_vm2 = vweird.f32 %v1668_v14 }
0x10f7   : > { %vm1040_vm5 = vmor %vm1038_vm3, %vm1039_vm2 }
0x10f8   : > { %v1034_v8 = vmul.f32 %v1668_v14, %v1033_v57 }
0x10fa   : > { %v1035_v15 = vmul.f32 0.5, %v1034_v8 }
0x10fc   : > { %v1036_v3 = vsub.f32 1.5, %v1035_v15  ;;  %v1543_v15 = vld [vmem:[%s2218_s2 + $0x50] sm:$0xf] }
0x10fe   : > { %v1037_v16 = vmul.f32 %v1668_v14, %v1036_v3  ;;  %v1583_v3 = vld [vmem:[%s2218_s2 + $0x58] sm:$0xf0] }
0x1100   : > { %v1041_v5 = vsel %vm1040_vm5, %v1668_v14, %v1037_v16  ;;  %v1544_v16 = vor.u32 %v1583_v3, %v1543_v15 }
0x1101   : > { %v1042_v19 = vmul.f32 %v1041_v5, %v1030_v17  ;;  %v1539_v17 = vld [vmem:[%s2218_s2 + $0x38] sm:$0xf] }
0x1103   : > { %v1044_v21 = vmul.f32 %v1043_v18, %v1042_v19  ;;  %v1580_v18 = vld [vmem:[%s2218_s2 + $0x40] sm:$0xf0] }
0x1104   : > { %v1540_v5 = vor.u32 %v1580_v18, %v1539_v17 }
0x1105   : > { %v2108_v22 = vadd.f32 %v1045_v20, %v1044_v21 }
0x1107   : > { %v1047_v23 = vpack.c.bf16 %v2108_v22, %v2108_v22 }
0x1109   : > { %1531 = vmatmul.msk.bf16.vlgmr.msrb.gmra.mxu1 %vm280_vm0, %v1047_v23 }
0x1186   : > { %v1063_v29 = vpop.f32.mrf.mxu1 }
0x1187   : > { %v1064_v25 = vadd.f32 %v1063_v29, %v1048_v61  ;;  %v1587_v61 = vld [vmem:[%s2219_s3 + $0x38] sm:$0xff] }
0x1188   : > { %1301 = vmatpush.bf16.msrb.mxu0 %v1587_v61 }
0x1189   : > { %v1067_v27 = vpack.c.bf16 %v1064_v25, %v1064_v25  ;;  %v1586_v25 = vld [vmem:[%s2219_s3 + $0x30] sm:$0xff] }
0x118b   : > { %1123 = vrot.lane.b32.xlu1 %v1067_v27, %s1747_s6  ;;  %1532 = vmatmul.msk.bf16.vlgmr.msrb.gmra.mxu2 %vm328_vm1, %v1067_v27  ;;  %s228_s6 = sand.u32 1, %s1735_s19  }
0x118c   : > { %1302 = vmatpush.bf16.msrb.mxu0 %v1586_v25  ;;  %s1431_s7 = sshll.u32 %s228_s6, 3  ;;  %s1341_s22 = scalar_lea.sflag [#allocation3], %s228_s6 }
0x118d   : > { %s230_s12 = scalar_lea.vmem [#allocation2], %s1431_s7 }
0x118e   : > { %v1065_v28 = vpop.f32.mrf.mxu1  ;;  %s1353_s14 = sshll.u32 %s230_s12, 4  ;;  %s1354_s14 = int_to_ptr.vmem [resolvable:$true] %s1353_s14 }
0x11fd   : > { %v1124_v6 = vpop.permute.xlu1 %1123 }
0x11fe   : > { %1534 = vmatmul.msk.bf16.vlgmr.msra.gmra.mxu0 %vm328_vm1, %v1124_v6 }
0x120e   : > { %v1084_v32 = vpop.f32.mrf.mxu2 }
0x120f   : > { %v1088_v33 = vsel %vm545_vm8, %v1084_v32, -inf }
0x1210   : > { %1089 = vmax.xlane.f32.xlu2 %v1088_v33 }
0x1216   : > { %v1086_v34 = vpop.f32.mrf.mxu2 }
0x1228   : > { %1158 = vrot.lane.b32.xlu2 %v2074_v24, %s1745_s26 }
0x127b   : > { %v1142_v35 = vpop.f32.mrf.mxu0 }
0x127c   : > { %v1146_v36 = vsel %vm545_vm8, %v1142_v35, -inf }
0x127d   : > { %1147 = vmax.xlane.f32.xlu1 %v1146_v36  ;;  %v2163_v36 = vld [vmem:[%s2220_s4 + $0x18] sm:$0x1f] }
0x1283   : > { %v1144_v37 = vpop.f32.mrf.mxu0  ;;  %v1090_v39 = vpop.xlane.xlu2 %1089 }
0x1284   : > { %v1091_v40 = vsub.f32 %v1084_v32, %v1090_v39  ;;  %v1233_v39 = vperm.slane %v2063_v62, 7  ;;  %v1238_v62 = vperm.slane %v2163_v36, 1 }
0x1286   : > { %v1092_v41 = vmul.f32 1.442695, %v1091_v40 }
0x1288   : > { %1669 = vpow2.f32 %v1092_v41 }
0x128b   : > { %v1159_v42 = vpop.permute.xlu2 %1158 }
0x128c   : > { %v1164_v44 = vsel %vm564_vm9, %v1159_v42, 0  ;;  %v1235_v42 = vperm.slane %v2163_v36, 0 }
0x128d   : > { %1173 = vmatpush.bf16.msra.mxu1 %v1164_v44 }
0x128e   : > { %v1670_v45 = vpop.eup %1669 }
0x128f   : > { %v1094_v46 = vsel %vm545_vm8, %v1670_v45, 0.0 }
0x1290   : > { %1095 = vadd.xlane.f32.xlu0 %v1094_v46 }
0x1296   : > { %1188 = vrot.lane.b32.xlu1 %v2037_v38, %s1750_s13 }
0x12f0   : > { %v1148_v26 = vpop.xlane.xlu1 %1147 }
0x12f1   : > { %v1149_v47 = vsub.f32 %v1142_v35, %v1148_v26  ;;  %v1585_v26 = vld [vmem:[%s2219_s3 + $0x28] sm:$0xff] }
0x12f2   : > { %1303 = vmatpush.bf16.msrb.mxu0 %v1585_v26 }
0x12f3   : > { %v1150_v48 = vmul.f32 1.442695, %v1149_v47  ;;  %v1584_v47 = vld [vmem:[%s2219_s3 + $0x20] sm:$0xff] }
0x12f5   : > { %1671 = vpow2.f32 %v1150_v48 }
0x12f6   : > { %1304 = vmatpush.bf16.msrb.mxu0 %v1584_v47 }
0x12fb   : > { %v1672_v49 = vpop.eup %1671 }
0x12fc   : > { %v1152_v51 = vsel %vm545_vm8, %v1672_v49, 0.0 }
0x12fd   : > { %1153 = vadd.xlane.f32.xlu0 %v1152_v51 }
0x1303   : > { %v1096_v52 = vpop.xlane.xlu0 %1095 }
0x1308   : > { %v1189_v31 = vpop.permute.xlu1 %1188 }
0x1309   : > { %1201 = vmatpush.bf16.msra.mxu2 %v1189_v31 }
0x1311   : > { %1101 = vrot.lane.b32.xlu0 %v2074_v24, %s1746_s30 }
0x1370   : > { %v1154_v53 = vpop.xlane.xlu0 %1153 }
0x1371   : > { %1673 = vrcp.f32 %v1154_v53 }
0x1372   : > { %1675 = vrcp.f32 %v1096_v52 }
0x1377   : > { %v1674_v54 = vpop.eup %1673 }
0x1378   : > { %v1156_v55 = vmul.f32 %v1674_v54, %v1672_v49  ;;  %v1676_v38 = vpop.eup %1675  ;;  %v1269_v54 = vperm.slane %v2163_v36, 2 }
0x1379   : > { %v1098_v58 = vmul.f32 %v1676_v38, %v1670_v45 }
0x137a   : > { %v1157_v56 = vpack.c.bf16 %v1156_v55, %v1156_v55 }
0x137b   : > { %v1099_v63 = vpack.c.bf16 %v1098_v58, %v1098_v58 }
0x137c   : > { %1535 = vmatmul.msk.bf16.vlgmr.msra.gmra.mxu1 %vm545_vm8, %v1157_v56 }
0x1383   : > { %v1102_v59 = vpop.permute.xlu0 %1101 }
0x1384   : > { %v1107_v60 = vsel %vm564_vm9, %v1102_v59, 0 }
0x1385   : > { %1116 = vmatpush.bf16.msra.mxu3 %v1107_v60 }
0x1388   : > { %1533 = vmatmul.msk.bf16.vlgmr.msra.gmra.mxu3 %vm545_vm8, %v1099_v63 }
0x1389   : > { %1260 = vmatpush.bf16.msrb.mxu3 %v1544_v16 }
0x138d   : > { %1261 = vmatpush.bf16.msrb.mxu3 %v1540_v5 }
0x13f9   : > { %v1175_v24 = vpop.f32.mrf.mxu1 }
0x13fa   : > { %1180 = vrot.lane.b32.xlu2 %v1175_v24, %s1751_s10 }
0x1401   : > { %v1177_v0 = vpop.f32.mrf.mxu1 }
0x1402   : > { %1186 = vrot.lane.b32.xlu2 %v2047_v43, %s1750_s13 }
0x140b   : > { %v1118_v1 = vpop.f32.mrf.mxu3 }
0x1413   : > { %v1120_v2 = vpop.f32.mrf.mxu3 }
0x1454   : > { %v1181_v4 = vpop.permute.xlu2 %1180 }
0x1455   : > { %v1183_v7 = vsel %vm328_vm1, %v1118_v1, %v1181_v4 }
0x1456   : > { %v1184_v9 = vpack.c.bf16 %v1183_v7, %v1183_v7 }
0x145c   : > { %v1187_v50 = vpop.permute.xlu2 %1186 }
0x145d   : > { %1202 = vmatpush.bf16.msra.mxu2 %v1187_v50 }
0x1460   : > { %1536 = vmatmul.msk.bf16.vlgmr.msra.gmra.mxu2 %vm280_vm0, %v1184_v9 }
0x14e3   : > { %v1204_v11 = vpop.f32.mrf.mxu2 }
0x14e4   : > { %v1205_v12 = vadd.f32 %v1204_v11, %v1185_v10 }
0x14e6   : > { %v1208_v13 = vadd.f32 %v1205_v12, %v2108_v22 }
0x14e8   : > { %v1209_v14 = vsel %vm280_vm0, %v1208_v13, 0.0  ;;  %v1213_v57 = vmul.f32 %v1208_v13, %v1208_v13 }
0x14e9   : > { %1210 = vadd.xlane.f32.xlu0 %v1209_v14 }
0x14ea   : > { %v1214_v43 = vsel %vm280_vm0, %v1213_v57, 0.0  ;;  %v1335_v57 = vperm.slane %v2163_v36, 3 }
0x14eb   : > { %v1206_v8 = vpop.f32.mrf.mxu2  ;;  %1215 = vadd.xlane.f32.xlu1 %v1214_v43 }
0x14ec   : > { %v1337_v8 = vperm.slane %v2163_v36, 4 }
0x155c   : > { %v1211_v19 = vpop.xlane.xlu0 %1210 }
0x155d   : > { %v1212_v20 = vmul.f32 %v1211_v19, %v1934_v30 }
0x155e   : > { %v1216_v21 = vpop.xlane.xlu1 %1215 }
0x155f   : > { %v1218_v22 = vmul.f32 %v1212_v20, %v1212_v20  ;;  %v1217_v23 = vmul.f32 %v1216_v21, %v1934_v30  ;;  %v1220_v37 = vsub.f32 %v1208_v13, %v1212_v20 }
0x1561   : > { %v1219_v29 = vsub.f32 %v1217_v23, %v1218_v22 }
0x1563   : > { %v1221_v27 = vadd.f32 1e-05, %v1219_v29 }
0x1565   : > { %1677 = vrsqrt.f32 %v1221_v27  ;;  %vm1228_vm6 = vweird.f32 %v1221_v27 }
0x156b   : > { %v1678_v28 = vpop.eup %1677 }
0x156c   : > { %v1223_v6 = vmul.f32 %v1678_v28, %v1221_v27  ;;  %vm1229_vm1 = vweird.f32 %v1678_v28 }
0x156d   : > { %vm1230_vm7 = vmor %vm1228_vm6, %vm1229_vm1 }
0x156e   : > { %v1224_v32 = vmul.f32 %v1678_v28, %v1223_v6 }
0x1570   : > { %v1225_v33 = vmul.f32 0.5, %v1224_v32 }
0x1572   : > { %v1226_v34 = vsub.f32 1.5, %v1225_v33 }
0x1574   : > { %v1227_v35 = vmul.f32 %v1678_v28, %v1226_v34 }
0x1576   : > { %v1231_v40 = vsel %vm1230_vm7, %v1678_v28, %v1227_v35 }
0x1577   : > { %v1232_v41 = vmul.f32 %v1231_v40, %v1220_v37 }
0x1579   : > { %v1234_v44 = vmul.f32 %v1233_v39, %v1232_v41 }
0x157b   : > { %v1236_v45 = vadd.f32 %v1235_v42, %v1234_v44 }
0x157d   : > { %v1237_v46 = vpack.c.bf16 %v1236_v45, %v1236_v45 }
0x157f   : > { %1545 = vmatmul.msk.bf16.vlgmr.msrb.gmra.mxu3 %vm280_vm0, %v1237_v46 }
0x1602   : > { %v1263_v48 = vpop.f32.mrf.mxu3 }
0x1603   : > { %v1264_v49 = vadd.f32 %v1263_v48, %v1238_v62 }
0x1605   : > { %v1267_v51 = vmax.f32 %v1264_v49, 0.0 }
0x1607   : > { %v1268_v52 = vpack.c.bf16 %v1267_v51, %v1267_v51 }
0x1609   : > { %1562 = vmatmul.msk.bf16.vlgmr.msrb.gmra.mxu0 %vm753_vm13, %v1268_v52 }
0x160a   : > { %v1265_v53 = vpop.f32.mrf.mxu3 }
0x1686   : > { %v1306_v55 = vpop.f32.mrf.mxu0 }
0x1687   : > { %v1307_v56 = vadd.f32 %v1306_v55, %v1269_v54 }
0x1689   : > { %v1310_v38 = vadd.f32 %v1307_v56, %v1236_v45 }
0x168b   : > { %v1311_v58 = vsel %vm280_vm0, %v1310_v38, 0.0  ;;  %v1315_v59 = vmul.f32 %v1310_v38, %v1310_v38 }
0x168c   : > { %1312 = vadd.xlane.f32.xlu2 %v1311_v58 }
0x168d   : > { %v1316_v60 = vsel %vm280_vm0, %v1315_v59, 0.0 }
0x168e   : > { %v1308_v63 = vpop.f32.mrf.mxu0  ;;  %1317 = vadd.xlane.f32.xlu0 %v1316_v60 }
0x16ff   : > { %v1313_v31 = vpop.xlane.xlu2 %1312 }
0x1700   : > { %v1314_v24 = vmul.f32 %v1313_v31, %v1934_v30 }
0x1701   : > { %v1318_v0 = vpop.xlane.xlu0 %1317 }
0x1702   : > { %v1320_v1 = vmul.f32 %v1314_v24, %v1314_v24  ;;  %v1319_v2 = vmul.f32 %v1318_v0, %v1934_v30  ;;  %v1322_v14 = vsub.f32 %v1310_v38, %v1314_v24 }
0x1704   : > { %v1321_v4 = vsub.f32 %v1319_v2, %v1320_v1 }
0x1706   : > { %v1323_v7 = vadd.f32 1e-05, %v1321_v4 }
0x1708   : > { %1679 = vrsqrt.f32 %v1323_v7  ;;  %vm1330_vm9 = vweird.f32 %v1323_v7 }
0x170e   : > { %v1680_v50 = vpop.eup %1679 }
0x170f   : > { %v1325_v9 = vmul.f32 %v1680_v50, %v1323_v7  ;;  %vm1331_vm8 = vweird.f32 %v1680_v50 }
0x1710   : > { %vm1332_vm10 = vmor %vm1330_vm9, %vm1331_vm8 }
0x1711   : > { %v1326_v10 = vmul.f32 %v1680_v50, %v1325_v9 }
0x1713   : > { %v1327_v11 = vmul.f32 0.5, %v1326_v10 }
0x1715   : > { %v1328_v12 = vsub.f32 1.5, %v1327_v11 }
0x1717   : > { %v1329_v13 = vmul.f32 %v1680_v50, %v1328_v12 }
0x1719   : > { %v1333_v30 = vsel %vm1332_vm10, %v1680_v50, %v1329_v13 }
0x171a   : > { %v1334_v43 = vmul.f32 %v1333_v30, %v1322_v14 }
0x171c   : > { %v1336_v15 = vmul.f32 %v1335_v57, %v1334_v43 }
0x171e   : > { %v1338_v3 = vadd.f32 %v1337_v8, %v1336_v15 }
0x1720   : > { %1339 = vst.msk [vmem:[%s230_s12] sm:$0xff] %vm280_vm0, %v1338_v3 }
0x1721   : > { %1708 = shalt.err (!%p1705_p3)
}
0x1722   : > { %1588 = dma.vmem_to_hbm [thread:$0]  (%p1821_p5), %s1354_s14, 128, %s1356_s15, %s1341_s22  }
0x1723 PF: > { %p1594_p4 = scmp.ge.s32.totalorder %s1743_s21, 2  ;;  %s1367_s6 = sand.u32 1, %s1731_s18  }
0x1724   : > { %s1368_s7 = scalar_lea.sflag [#allocation3], %s1367_s6 }
0x1725   : > { %p1591_p7 = pnand %p1594_p4, %p1825_p6 }
0x1727   : > { %p1592_p8 = pneg %p1591_p7 }
0x1729   : > { %1726 = dma.done.wait (%p1592_p8), %s1368_s7, 128  }
0x172a   : > { %1728 = vsyncadd (%p1592_p8), %s1368_s7, 4294967168  ;;  %p15_p9 = scmp.ge.s32.totalorder %s1808_s24, 4   ;;  %s2224_s18 = smov %s1735_s19 }
0x172b   : > { %s2225_s19 = smov %s1739_s20  ;;  %s2226_s20 = smov %s1819_s27 }
0x172c   : > { %s2227_s21 = smov %s1808_s24  ;;  %17 = sbr.rel (!%p15_p9) target bundleno = 3 (0x3), region = 81 }
0x1731   :  { %1374 = vsyncpa [#allocation3], 1 }
0x1732   :  { %1376 = vsyncpa [#allocation3 + $0x1], 1 }

</bundles_post_ra>
